<compile_context>
chip_gen: v6e
topology: v6e:2x2x1
jax: 0.10.0
libtpu: 0.0.40
codegen_flags: <defaults>
</compile_context>

<pallas_src>
import jax
import jax.numpy as jnp
from jax.experimental import pallas as pl
from jax.experimental.pallas import tpu as pltpu

STATE_SIZE = 8
STATE_PAD = 128   # lane-dense padded input width  (>= STATE_SIZE, multiple of 128)
ACTION_SIZE = 4
Q_PAD = 128       # lane-dense padded output width (>= ACTION_SIZE, multiple of 128)
HIDDEN = 256
TILE_M = 256      # rows per grid step: whole minibatch -> grid=(1,)
ROW_CHUNK = 128   # rows per in-kernel compute chain (bounds register pressure)
BATCH = 256       # DQN replay minibatch


def qfunc_kernel(x_ref, w1_ref, b1_ref, w2_ref, b2_ref,
                 w3_ref, b3_ref, wq_ref, bq_ref, o_ref):
    # One (TILE_M, *) row-tile per grid step; weights are bf16 and VMEM-resident
    # (constant block index).  The tile is processed in ROW_CHUNK-row chains so
    # each f32 activation is (128,256) = 32 vregs instead of 64 (no forced
    # whole-register-file spill), per the review's guidance.
    bf16 = jnp.bfloat16
    n_chunks = o_ref.shape[0] // ROW_CHUNK
    for c in range(n_chunks):                       # static, unrolled at trace time
        rows = pl.ds(c * ROW_CHUNK, ROW_CHUNK)
        x = x_ref[rows, :].astype(bf16)
        h = jnp.dot(x, w1_ref[...], preferred_element_type=jnp.float32) + b1_ref[...]
        h = jnp.maximum(h, 0.0).astype(bf16)
        h = jnp.dot(h, w2_ref[...], preferred_element_type=jnp.float32) + b2_ref[...]
        h = jnp.maximum(h, 0.0).astype(bf16)
        h = jnp.dot(h, w3_ref[...], preferred_element_type=jnp.float32) + b3_ref[...]
        h = jnp.maximum(h, 0.0).astype(bf16)
        q = jnp.dot(h, wq_ref[...], preferred_element_type=jnp.float32) + bq_ref[...]
        o_ref[rows, :] = q.astype(o_ref.dtype)      # lane-dense (128, 128) store


def _nbytes(a):
    return int(a.size) * int(a.dtype.itemsize)


def q_function_forward(x, kernel_params, *, tile_m=TILE_M):
    """x: (B, STATE_SIZE) f32. kernel_params: packed (bf16 weights, padded)."""
    w1, b1, w2, b2, w3, b3, wq, bq = kernel_params
    B = x.shape[0]
    num_tiles = pl.cdiv(B, tile_m)
    b_pad = num_tiles * tile_m

    # Pad batch rows up to a tile multiple and state columns to 128 lanes.
    x_p = jnp.zeros((b_pad, STATE_PAD), x.dtype).at[:B, :STATE_SIZE].set(x)

    # Weight / bias blocks: full array, same block for every grid step (VMEM-resident).
    def resident_spec(shape):
        ndim = len(shape)
        return pl.BlockSpec(shape, lambda i, _n=ndim: (0,) * _n)

    flops = 2 * b_pad * (STATE_PAD * HIDDEN + 2 * HIDDEN * HIDDEN + HIDDEN * Q_PAD)
    bytes_accessed = (
        _nbytes(x_p) + b_pad * Q_PAD * 4
        + sum(_nbytes(a) for a in (w1, b1, w2, b2, w3, b3, wq, bq))
    )

    out_padded = pl.pallas_call(
        qfunc_kernel,
        out_shape=jax.ShapeDtypeStruct((b_pad, Q_PAD), jnp.float32),
        grid=(num_tiles,),
        in_specs=[
            pl.BlockSpec((tile_m, STATE_PAD), lambda i: (i, 0)),
            resident_spec(w1.shape), resident_spec(b1.shape),
            resident_spec(w2.shape), resident_spec(b2.shape),
            resident_spec(w3.shape), resident_spec(b3.shape),
            resident_spec(wq.shape), resident_spec(bq.shape),
        ],
        out_specs=pl.BlockSpec((tile_m, Q_PAD), lambda i: (i, 0)),
        # Rows are independent; with grid=(1,) this is a no-op.  For an explicit
        # 2-TensorCore split on v7x, use CORE_PARALLEL with grid=(2,) instead.
        compiler_params=pltpu.CompilerParams(
            dimension_semantics=("parallel",)),
        cost_estimate=pl.CostEstimate(
            flops=flops, transcendentals=0, bytes_accessed=bytes_accessed),
    )(x_p, w1, b1, w2, b2, w3, b3, wq, bq)

    # Slice padded batch rows and padded Q lanes back to the logical shape.
    # (Padded rows hold ReLU(bias) garbage -- never use out_padded directly.)
    return out_padded[:B, :ACTION_SIZE]


def init_params(key):
    # Deterministic synthetic init (mimics torch.nn.Linear's U(-1/sqrt(fan_in), ...)).
    # Weights stored (in_features, out_features) so the kernel computes x @ W + b
    # (equivalent to PyTorch's x @ W^T + b with W of shape (out, in)).
    def linear(key, fan_in, fan_out):
        kw, kb = jax.random.split(key)
        bound = 1.0 / jnp.sqrt(fan_in)
        w = jax.random.uniform(kw, (fan_in, fan_out), jnp.float32, -bound, bound)
        b = jax.random.uniform(kb, (1, fan_out), jnp.float32, -bound, bound)
        return w, b

    k1, k2, k3, k4 = jax.random.split(key, 4)
    w1, b1 = linear(k1, STATE_SIZE, HIDDEN)
    w2, b2 = linear(k2, HIDDEN, HIDDEN)
    w3, b3 = linear(k3, HIDDEN, HIDDEN)
    wq, bq = linear(k4, HIDDEN, ACTION_SIZE)
    return (w1, b1, w2, b2, w3, b3, wq, bq)


def pack_params_for_kernel(params):
    """bf16 weights (halve DMA), f32 biases; pad w1 rows to 128, q head to 128 lanes."""
    w1, b1, w2, b2, w3, b3, wq, bq = params
    bf = jnp.bfloat16
    w1_p = jnp.zeros((STATE_PAD, HIDDEN), jnp.float32).at[:STATE_SIZE, :].set(w1)
    wq_p = jnp.zeros((HIDDEN, Q_PAD), jnp.float32).at[:, :ACTION_SIZE].set(wq)
    bq_p = jnp.zeros((1, Q_PAD), jnp.float32).at[:, :ACTION_SIZE].set(bq)
    return (w1_p.astype(bf), b1, w2.astype(bf), b2, w3.astype(bf), b3,
            wq_p.astype(bf), bq_p)


def reference_forward_bf16(x, params):
    # Mimics the kernel's numerics: bf16 MXU inputs, f32 accumulation.
    w1, b1, w2, b2, w3, b3, wq, bq = params
    bf = jnp.bfloat16

    def lin(h, w, b):
        return jnp.dot(h.astype(bf), w.astype(bf),
                       preferred_element_type=jnp.float32) + b

    h = jnp.maximum(lin(x, w1, b1), 0.0)
    h = jnp.maximum(lin(h, w2, b2), 0.0)
    h = jnp.maximum(lin(h, w3, b3), 0.0)
    return lin(h, wq, bq)


def reference_forward_f32(x, params):
    # True f32 PyTorch Q_function semantics (bound on the bf16-cast error).
    w1, b1, w2, b2, w3, b3, wq, bq = params
    h = jnp.maximum(x @ w1 + b1, 0.0)
    h = jnp.maximum(h @ w2 + b2, 0.0)
    h = jnp.maximum(h @ w3 + b3, 0.0)
    return h @ wq + bq


if __name__ == "__main__":
    key = jax.random.PRNGKey(0)
    kx, kp = jax.random.split(key)

    x = jax.random.normal(kx, (BATCH, STATE_SIZE), jnp.float32)
    params_f32 = init_params(kp)
    kernel_params = pack_params_for_kernel(params_f32)

    q_pallas = q_function_forward(x, kernel_params)
    jax.block_until_ready(q_pallas)
    assert q_pallas.shape == (BATCH, ACTION_SIZE)

    # Tight check vs. a reference with matching (bf16-weight) numerics.
    q_ref_bf16 = reference_forward_bf16(x, params_f32)
    assert jnp.allclose(q_pallas, q_ref_bf16, atol=1e-2, rtol=1e-2), float(
        jnp.max(jnp.abs(q_pallas - q_ref_bf16)))

    # Loose check vs. the true f32 PyTorch forward (bounds the bf16-cast error).
    q_ref_f32 = reference_forward_f32(x, params_f32)
    assert jnp.allclose(q_pallas, q_ref_f32, atol=1e-1, rtol=1e-1), float(
        jnp.max(jnp.abs(q_pallas - q_ref_f32)))

    print("KERNEL_OK")
</pallas_src>

<mosaic_0001>
module attributes {stable_mosaic.version = 11 : i64} {
  func.func @qfunc_kernel(%arg0: i32, %arg1: memref<256x128xf32, #tpu.memory_space<vmem>>, %arg2: memref<128x256xbf16, #tpu.memory_space<vmem>>, %arg3: memref<1x256xf32, #tpu.memory_space<vmem>>, %arg4: memref<256x256xbf16, #tpu.memory_space<vmem>>, %arg5: memref<1x256xf32, #tpu.memory_space<vmem>>, %arg6: memref<256x256xbf16, #tpu.memory_space<vmem>>, %arg7: memref<1x256xf32, #tpu.memory_space<vmem>>, %arg8: memref<256x128xbf16, #tpu.memory_space<vmem>>, %arg9: memref<1x128xf32, #tpu.memory_space<vmem>>, %arg10: memref<256x128xf32, #tpu.memory_space<vmem>>) attributes {dimension_semantics = [#tpu.dimension_semantics<parallel>], iteration_bounds = array<i64: 1>, scalar_prefetch = 0 : i64, scratch_operands = 0 : i64, tpu.core_type = #tpu.core_type<tc>, window_params = [{transform_indices = @transform_0, window_bounds = array<i64: 256, 128>}, {pipeline_mode = #tpu.pipeline_mode<synchronous>, transform_indices = @transform_1, window_bounds = array<i64: 128, 256>}, {pipeline_mode = #tpu.pipeline_mode<synchronous>, transform_indices = @transform_2, window_bounds = array<i64: 1, 256>}, {pipeline_mode = #tpu.pipeline_mode<synchronous>, transform_indices = @transform_3, window_bounds = array<i64: 256, 256>}, {pipeline_mode = #tpu.pipeline_mode<synchronous>, transform_indices = @transform_4, window_bounds = array<i64: 1, 256>}, {pipeline_mode = #tpu.pipeline_mode<synchronous>, transform_indices = @transform_5, window_bounds = array<i64: 256, 256>}, {pipeline_mode = #tpu.pipeline_mode<synchronous>, transform_indices = @transform_6, window_bounds = array<i64: 1, 256>}, {pipeline_mode = #tpu.pipeline_mode<synchronous>, transform_indices = @transform_7, window_bounds = array<i64: 256, 128>}, {pipeline_mode = #tpu.pipeline_mode<synchronous>, transform_indices = @transform_8, window_bounds = array<i64: 1, 128>}, {transform_indices = @transform_9, window_bounds = array<i64: 256, 128>}]} {
    %c0 = arith.constant 0 : index
    %c0_0 = arith.constant 0 : index
    %0 = vector.load %arg1[%c0, %c0_0] : memref<256x128xf32, #tpu.memory_space<vmem>>, vector<128x128xf32>
    %1 = arith.truncf %0 : vector<128x128xf32> to vector<128x128xbf16>
    %c0_1 = arith.constant 0 : index
    %c0_2 = arith.constant 0 : index
    %2 = vector.load %arg2[%c0_1, %c0_2] : memref<128x256xbf16, #tpu.memory_space<vmem>>, vector<128x256xbf16>
    %cst = arith.constant dense<0.000000e+00> : vector<128x256xf32>
    %3 = tpu.matmul %1, %2, %cst {dimension_numbers = #tpu.dot_dimension_numbers<[1], [0], [0], [1], [0, 0, 1, 1], [], []>} : vector<128x128xbf16>, vector<128x256xbf16>, vector<128x256xf32> -> vector<128x256xf32>
    %c0_3 = arith.constant 0 : index
    %c0_4 = arith.constant 0 : index
    %4 = vector.load %arg3[%c0_3, %c0_4] : memref<1x256xf32, #tpu.memory_space<vmem>>, vector<1x256xf32>
    %5 = vector.broadcast %4 : vector<1x256xf32> to vector<128x256xf32>
    %6 = arith.addf %3, %5 : vector<128x256xf32>
    %cst_5 = arith.constant 0.000000e+00 : f32
    %7 = vector.broadcast %cst_5 : f32 to vector<128x256xf32>
    %8 = arith.maximumf %6, %7 : vector<128x256xf32>
    %9 = arith.truncf %8 : vector<128x256xf32> to vector<128x256xbf16>
    %c0_6 = arith.constant 0 : index
    %c0_7 = arith.constant 0 : index
    %10 = vector.load %arg4[%c0_6, %c0_7] : memref<256x256xbf16, #tpu.memory_space<vmem>>, vector<256x256xbf16>
    %cst_8 = arith.constant dense<0.000000e+00> : vector<128x256xf32>
    %11 = tpu.matmul %9, %10, %cst_8 {dimension_numbers = #tpu.dot_dimension_numbers<[1], [0], [0], [1], [0, 0, 1, 1], [], []>} : vector<128x256xbf16>, vector<256x256xbf16>, vector<128x256xf32> -> vector<128x256xf32>
    %c0_9 = arith.constant 0 : index
    %c0_10 = arith.constant 0 : index
    %12 = vector.load %arg5[%c0_9, %c0_10] : memref<1x256xf32, #tpu.memory_space<vmem>>, vector<1x256xf32>
    %13 = vector.broadcast %12 : vector<1x256xf32> to vector<128x256xf32>
    %14 = arith.addf %11, %13 : vector<128x256xf32>
    %cst_11 = arith.constant 0.000000e+00 : f32
    %15 = vector.broadcast %cst_11 : f32 to vector<128x256xf32>
    %16 = arith.maximumf %14, %15 : vector<128x256xf32>
    %17 = arith.truncf %16 : vector<128x256xf32> to vector<128x256xbf16>
    %c0_12 = arith.constant 0 : index
    %c0_13 = arith.constant 0 : index
    %18 = vector.load %arg6[%c0_12, %c0_13] : memref<256x256xbf16, #tpu.memory_space<vmem>>, vector<256x256xbf16>
    %cst_14 = arith.constant dense<0.000000e+00> : vector<128x256xf32>
    %19 = tpu.matmul %17, %18, %cst_14 {dimension_numbers = #tpu.dot_dimension_numbers<[1], [0], [0], [1], [0, 0, 1, 1], [], []>} : vector<128x256xbf16>, vector<256x256xbf16>, vector<128x256xf32> -> vector<128x256xf32>
    %c0_15 = arith.constant 0 : index
    %c0_16 = arith.constant 0 : index
    %20 = vector.load %arg7[%c0_15, %c0_16] : memref<1x256xf32, #tpu.memory_space<vmem>>, vector<1x256xf32>
    %21 = vector.broadcast %20 : vector<1x256xf32> to vector<128x256xf32>
    %22 = arith.addf %19, %21 : vector<128x256xf32>
    %cst_17 = arith.constant 0.000000e+00 : f32
    %23 = vector.broadcast %cst_17 : f32 to vector<128x256xf32>
    %24 = arith.maximumf %22, %23 : vector<128x256xf32>
    %25 = arith.truncf %24 : vector<128x256xf32> to vector<128x256xbf16>
    %c0_18 = arith.constant 0 : index
    %c0_19 = arith.constant 0 : index
    %26 = vector.load %arg8[%c0_18, %c0_19] : memref<256x128xbf16, #tpu.memory_space<vmem>>, vector<256x128xbf16>
    %cst_20 = arith.constant dense<0.000000e+00> : vector<128x128xf32>
    %27 = tpu.matmul %25, %26, %cst_20 {dimension_numbers = #tpu.dot_dimension_numbers<[1], [0], [0], [1], [0, 0, 1, 1], [], []>} : vector<128x256xbf16>, vector<256x128xbf16>, vector<128x128xf32> -> vector<128x128xf32>
    %c0_21 = arith.constant 0 : index
    %c0_22 = arith.constant 0 : index
    %28 = vector.load %arg9[%c0_21, %c0_22] : memref<1x128xf32, #tpu.memory_space<vmem>>, vector<1x128xf32>
    %29 = vector.broadcast %28 : vector<1x128xf32> to vector<128x128xf32>
    %30 = arith.addf %27, %29 : vector<128x128xf32>
    %c0_23 = arith.constant 0 : index
    %c0_24 = arith.constant 0 : index
    %31 = vector.load %arg10[%c0_23, %c0_24] : memref<256x128xf32, #tpu.memory_space<vmem>>, vector<128x128xf32>
    tpu.vector_store %arg10[%c0_23, %c0_24], %30 {strides = array<i32>} : memref<256x128xf32, #tpu.memory_space<vmem>>, vector<128x128xf32>,
    %c128 = arith.constant 128 : index
    %c0_25 = arith.constant 0 : index
    %32 = vector.load %arg1[%c128, %c0_25] : memref<256x128xf32, #tpu.memory_space<vmem>>, vector<128x128xf32>
    %33 = arith.truncf %32 : vector<128x128xf32> to vector<128x128xbf16>
    %c0_26 = arith.constant 0 : index
    %c0_27 = arith.constant 0 : index
    %34 = vector.load %arg2[%c0_26, %c0_27] : memref<128x256xbf16, #tpu.memory_space<vmem>>, vector<128x256xbf16>
    %cst_28 = arith.constant dense<0.000000e+00> : vector<128x256xf32>
    %35 = tpu.matmul %33, %34, %cst_28 {dimension_numbers = #tpu.dot_dimension_numbers<[1], [0], [0], [1], [0, 0, 1, 1], [], []>} : vector<128x128xbf16>, vector<128x256xbf16>, vector<128x256xf32> -> vector<128x256xf32>
    %c0_29 = arith.constant 0 : index
    %c0_30 = arith.constant 0 : index
    %36 = vector.load %arg3[%c0_29, %c0_30] : memref<1x256xf32, #tpu.memory_space<vmem>>, vector<1x256xf32>
    %37 = vector.broadcast %36 : vector<1x256xf32> to vector<128x256xf32>
    %38 = arith.addf %35, %37 : vector<128x256xf32>
    %cst_31 = arith.constant 0.000000e+00 : f32
    %39 = vector.broadcast %cst_31 : f32 to vector<128x256xf32>
    %40 = arith.maximumf %38, %39 : vector<128x256xf32>
    %41 = arith.truncf %40 : vector<128x256xf32> to vector<128x256xbf16>
    %c0_32 = arith.constant 0 : index
    %c0_33 = arith.constant 0 : index
    %42 = vector.load %arg4[%c0_32, %c0_33] : memref<256x256xbf16, #tpu.memory_space<vmem>>, vector<256x256xbf16>
    %cst_34 = arith.constant dense<0.000000e+00> : vector<128x256xf32>
    %43 = tpu.matmul %41, %42, %cst_34 {dimension_numbers = #tpu.dot_dimension_numbers<[1], [0], [0], [1], [0, 0, 1, 1], [], []>} : vector<128x256xbf16>, vector<256x256xbf16>, vector<128x256xf32> -> vector<128x256xf32>
    %c0_35 = arith.constant 0 : index
    %c0_36 = arith.constant 0 : index
    %44 = vector.load %arg5[%c0_35, %c0_36] : memref<1x256xf32, #tpu.memory_space<vmem>>, vector<1x256xf32>
    %45 = vector.broadcast %44 : vector<1x256xf32> to vector<128x256xf32>
    %46 = arith.addf %43, %45 : vector<128x256xf32>
    %cst_37 = arith.constant 0.000000e+00 : f32
    %47 = vector.broadcast %cst_37 : f32 to vector<128x256xf32>
    %48 = arith.maximumf %46, %47 : vector<128x256xf32>
    %49 = arith.truncf %48 : vector<128x256xf32> to vector<128x256xbf16>
    %c0_38 = arith.constant 0 : index
    %c0_39 = arith.constant 0 : index
    %50 = vector.load %arg6[%c0_38, %c0_39] : memref<256x256xbf16, #tpu.memory_space<vmem>>, vector<256x256xbf16>
    %cst_40 = arith.constant dense<0.000000e+00> : vector<128x256xf32>
    %51 = tpu.matmul %49, %50, %cst_40 {dimension_numbers = #tpu.dot_dimension_numbers<[1], [0], [0], [1], [0, 0, 1, 1], [], []>} : vector<128x256xbf16>, vector<256x256xbf16>, vector<128x256xf32> -> vector<128x256xf32>
    %c0_41 = arith.constant 0 : index
    %c0_42 = arith.constant 0 : index
    %52 = vector.load %arg7[%c0_41, %c0_42] : memref<1x256xf32, #tpu.memory_space<vmem>>, vector<1x256xf32>
    %53 = vector.broadcast %52 : vector<1x256xf32> to vector<128x256xf32>
    %54 = arith.addf %51, %53 : vector<128x256xf32>
    %cst_43 = arith.constant 0.000000e+00 : f32
    %55 = vector.broadcast %cst_43 : f32 to vector<128x256xf32>
    %56 = arith.maximumf %54, %55 : vector<128x256xf32>
    %57 = arith.truncf %56 : vector<128x256xf32> to vector<128x256xbf16>
    %c0_44 = arith.constant 0 : index
    %c0_45 = arith.constant 0 : index
    %58 = vector.load %arg8[%c0_44, %c0_45] : memref<256x128xbf16, #tpu.memory_space<vmem>>, vector<256x128xbf16>
    %cst_46 = arith.constant dense<0.000000e+00> : vector<128x128xf32>
    %59 = tpu.matmul %57, %58, %cst_46 {dimension_numbers = #tpu.dot_dimension_numbers<[1], [0], [0], [1], [0, 0, 1, 1], [], []>} : vector<128x256xbf16>, vector<256x128xbf16>, vector<128x128xf32> -> vector<128x128xf32>
    %c0_47 = arith.constant 0 : index
    %c0_48 = arith.constant 0 : index
    %60 = vector.load %arg9[%c0_47, %c0_48] : memref<1x128xf32, #tpu.memory_space<vmem>>, vector<1x128xf32>
    %61 = vector.broadcast %60 : vector<1x128xf32> to vector<128x128xf32>
    %62 = arith.addf %59, %61 : vector<128x128xf32>
    %c128_49 = arith.constant 128 : index
    %c0_50 = arith.constant 0 : index
    %63 = vector.load %arg10[%c128_49, %c0_50] : memref<256x128xf32, #tpu.memory_space<vmem>>, vector<128x128xf32>
    tpu.vector_store %arg10[%c128_49, %c0_50], %62 {strides = array<i32>} : memref<256x128xf32, #tpu.memory_space<vmem>>, vector<128x128xf32>,
    return
  }
  func.func @transform_0(%arg0: i32) -> (i32, i32) {
    %c0_i32 = arith.constant 0 : i32
    %c0_i32_0 = arith.constant 0 : i32
    return %arg0, %c0_i32 : i32, i32
  }
  func.func @transform_1(%arg0: i32) -> (i32, i32) {
    %c0_i32 = arith.constant 0 : i32
    %c0_i32_0 = arith.constant 0 : i32
    %c0_i32_1 = arith.constant 0 : i32
    return %c0_i32, %c0_i32_0 : i32, i32
  }
  func.func @transform_2(%arg0: i32) -> (i32, i32) {
    %c0_i32 = arith.constant 0 : i32
    %c0_i32_0 = arith.constant 0 : i32
    %c0_i32_1 = arith.constant 0 : i32
    return %c0_i32, %c0_i32_0 : i32, i32
  }
  func.func @transform_3(%arg0: i32) -> (i32, i32) {
    %c0_i32 = arith.constant 0 : i32
    %c0_i32_0 = arith.constant 0 : i32
    %c0_i32_1 = arith.constant 0 : i32
    return %c0_i32, %c0_i32_0 : i32, i32
  }
  func.func @transform_4(%arg0: i32) -> (i32, i32) {
    %c0_i32 = arith.constant 0 : i32
    %c0_i32_0 = arith.constant 0 : i32
    %c0_i32_1 = arith.constant 0 : i32
    return %c0_i32, %c0_i32_0 : i32, i32
  }
  func.func @transform_5(%arg0: i32) -> (i32, i32) {
    %c0_i32 = arith.constant 0 : i32
    %c0_i32_0 = arith.constant 0 : i32
    %c0_i32_1 = arith.constant 0 : i32
    return %c0_i32, %c0_i32_0 : i32, i32
  }
  func.func @transform_6(%arg0: i32) -> (i32, i32) {
    %c0_i32 = arith.constant 0 : i32
    %c0_i32_0 = arith.constant 0 : i32
    %c0_i32_1 = arith.constant 0 : i32
    return %c0_i32, %c0_i32_0 : i32, i32
  }
  func.func @transform_7(%arg0: i32) -> (i32, i32) {
    %c0_i32 = arith.constant 0 : i32
    %c0_i32_0 = arith.constant 0 : i32
    %c0_i32_1 = arith.constant 0 : i32
    return %c0_i32, %c0_i32_0 : i32, i32
  }
  func.func @transform_8(%arg0: i32) -> (i32, i32) {
    %c0_i32 = arith.constant 0 : i32
    %c0_i32_0 = arith.constant 0 : i32
    %c0_i32_1 = arith.constant 0 : i32
    return %c0_i32, %c0_i32_0 : i32, i32
  }
  func.func @transform_9(%arg0: i32) -> (i32, i32) {
    %c0_i32 = arith.constant 0 : i32
    %c0_i32_0 = arith.constant 0 : i32
    return %arg0, %c0_i32 : i32, i32
  }
}

</mosaic_0001>

<bundles_post_ra>
// kernel: tpu_custom_call.1
= control target key start
LH: loop header
LB: loop body
LE: loop exit
PB: predicated region body
PF: predicated region fallthrough
CT: control target
= control target key end

     0   :  { %14 = vsyncpa [#allocation3], 0  ;;  %s3845_s0 = inlined_call_operand.hbm [shape: f32[256,128], index: 0, kind: input, shape index: {}]   ;;  %s3846_s1 = inlined_call_operand.hbm [shape: bf16[128,256], index: 1, kind: input, shape index: {}]   ;;  %s3847_s2 = inlined_call_operand.vmem [shape: f32[1,256], index: 2, kind: input, shape index: {}]   ;;  %s3848_s3 = inlined_call_operand.hbm [shape: bf16[256,256], index: 3, kind: input, shape index: {}]   ;;  %s3849_s4 = inlined_call_operand.vmem [shape: f32[1,256], index: 4, kind: input, shape index: {}]   ;;  %s3850_s5 = inlined_call_operand.hbm [shape: bf16[256,256], index: 5, kind: input, shape index: {}]   ;;  %s3851_s6 = inlined_call_operand.vmem [shape: f32[1,256], index: 6, kind: input, shape index: {}]   ;;  %s3852_s7 = inlined_call_operand.hbm [shape: bf16[256,128], index: 7, kind: input, shape index: {}]   ;;  %s3853_s8 = inlined_call_operand.vmem [shape: f32[1,128], index: 8, kind: input, shape index: {}]   ;;  %s3854_s9 = inlined_call_operand.hbm [shape: f32[256,128], index: 9, kind: output, shape index: {}]  }
   0x1   :  { %15 = vsyncpa [#allocation6], 0 }
   0x2   :  { %16 = vsyncpa [#allocation9], 0 }
   0x3   :  { %17 = vsyncpa [#allocation4], 0  ;;  %s3407_s30 = smov [#allocation5]   ;;  %s3408_s11 = smov [#allocation8]  }
   0x4   :  { %s35_s10 = sshll.u32 %s3407_s30, 4  ;;  %s63_s12 = sshll.u32 %s3408_s11, 4  ;;  %s36_s10 = int_to_ptr.vmem [resolvable:$true] %s35_s10  ;;  %s64_s12 = int_to_ptr.vmem [resolvable:$true] %s63_s12 }
   0x5   :  { %s3287_s13 = scalar_lea.vmem %s36_s10, 2048  ;;  %p3292_p1 = scmp.lt.s32.totalorder %s36_s10, %s36_s10 }
   0x6   :  { %p3288_p0 = scmp.ne.s32.totalorder %s36_s10, %s3287_s13  ;;  %p3293_p2 = scmp.lt.s32.totalorder %s3287_s13, %s3287_s13 }
   0x8   :  { %p3294_p3 = por %p3293_p2, %p3292_p1 }
   0xa   :  { %p3295_p4 = pnand %p3294_p3, %p3288_p0 }
   0xc   :  { %3298 = shalt.err (!%p3295_p4)
}
   0xd   :  { %s3409_s14 = smov 128   ;;  %s3410_s15 = smov 8  }
   0xe   :  { %41 = dma.hbm_to_vmem [thread:$0]  %s3846_s1, 2048, %s36_s10, [#allocation6], %s3409_s14, %s3409_s14, %s3410_s15  }
   0xf   :  { %s3307_s18 = scalar_lea.vmem %s64_s12, 4096  ;;  %p3312_p6 = scmp.lt.s32.totalorder %s64_s12, %s64_s12 }
  0x10   :  { %p3308_p5 = scmp.ne.s32.totalorder %s64_s12, %s3307_s18  ;;  %p3313_p7 = scmp.lt.s32.totalorder %s3307_s18, %s3307_s18 }
  0x12   :  { %p3314_p8 = por %p3313_p7, %p3312_p6 }
  0x14   :  { %p3315_p9 = pnand %p3314_p8, %p3308_p5 }
  0x16   :  { %3318 = shalt.err (!%p3315_p9)
}
  0x17   :  { %69 = dma.hbm_to_vmem [thread:$0]  %s3850_s5, 4096, %s64_s12, [#allocation9], %s3409_s14, %s3409_s14, %s3410_s15  }
  0x18   :  { %s3411_s21 = smov [#allocation2]   ;;  %s3412_s23 = smov [#allocation7]  }
  0x19   :  { %s23_s22 = sshll.u32 %s3411_s21, 4  ;;  %s49_s24 = sshll.u32 %s3412_s23, 4  ;;  %s24_s22 = int_to_ptr.vmem [resolvable:$true] %s23_s22  ;;  %s50_s24 = int_to_ptr.vmem [resolvable:$true] %s49_s24 }
  0x1a   :  { %s3327_s1 = scalar_lea.vmem %s24_s22, 4096  ;;  %p3332_p11 = scmp.lt.s32.totalorder %s24_s22, %s24_s22 }
  0x1b   :  { %p3328_p10 = scmp.ne.s32.totalorder %s24_s22, %s3327_s1  ;;  %p3333_p12 = scmp.lt.s32.totalorder %s3327_s1, %s3327_s1 }
  0x1d   :  { %p3334_p13 = por %p3333_p12, %p3332_p11 }
  0x1f   :  { %p3335_p0 = pnand %p3334_p13, %p3328_p10 }
  0x21   :  { %3338 = shalt.err (!%p3335_p0)
}
  0x22   :  { %29 = dma.hbm_to_vmem [thread:$0]  %s3845_s0, 4096, %s24_s22, [#allocation3], %s3409_s14, %s3409_s14, %s3410_s15  }
  0x23   :  { %s3347_s5 = scalar_lea.vmem %s50_s24, 4096  ;;  %p3352_p2 = scmp.lt.s32.totalorder %s50_s24, %s50_s24 }
  0x24   :  { %p3348_p1 = scmp.ne.s32.totalorder %s50_s24, %s3347_s5  ;;  %p3353_p3 = scmp.lt.s32.totalorder %s3347_s5, %s3347_s5 }
  0x26   :  { %p3354_p4 = por %p3353_p3, %p3352_p2 }
  0x28   :  { %p3355_p5 = pnand %p3354_p4, %p3348_p1 }
  0x2a   :  { %3358 = shalt.err (!%p3355_p5)
}
  0x2b   :  { %55 = dma.hbm_to_vmem [thread:$0]  %s3848_s3, 4096, %s50_s24, [#allocation6], %s3409_s14, %s3409_s14, %s3410_s15  }
  0x2c   :  { %s3413_s29 = smov [#allocation10]  }
  0x2d   :  { %s77_s30 = sshll.u32 %s3413_s29, 4  ;;  %s78_s30 = int_to_ptr.vmem [resolvable:$true] %s77_s30 }
  0x2e   :  { %s3367_s10 = scalar_lea.vmem %s78_s30, 2048  ;;  %p3372_p7 = scmp.lt.s32.totalorder %s78_s30, %s78_s30 }
  0x2f   :  { %p3368_p6 = scmp.ne.s32.totalorder %s78_s30, %s3367_s10  ;;  %p3373_p8 = scmp.lt.s32.totalorder %s3367_s10, %s3367_s10 }
  0x31   :  { %p3374_p9 = por %p3373_p8, %p3372_p7 }
  0x33   :  { %p3375_p10 = pnand %p3374_p9, %p3368_p6 }
  0x35   :  { %3378 = shalt.err (!%p3375_p10)
}
  0x36   :  { %s3414_s0 = smov 64   ;;  %s3415_s11 = smov 4  }
  0x37   :  { %83 = dma.hbm_to_vmem [thread:$0]  %s3852_s7, 2048, %s78_s30, [#allocation9], %s3414_s0, %s3414_s0, %s3415_s11  }
  0x38   :  { %3399 = dma.done.wait [#allocation3], 4096  }
  0x39   :  { %3400 = vsyncadd [#allocation3], 4294963200 }
  0x3a   :  { %3401 = dma.done.wait [#allocation6], 6144  }
  0x3b   :  { %3402 = vsyncadd [#allocation6], 4294961152 }
  0x3c   :  { %3403 = dma.done.wait [#allocation9], 6144  }
  0x3d   :  { %3404 = vsyncadd [#allocation9], 4294961152  ;;  %v3416_v0 = vmov 0   ;;  %v3012_v1 = vld [vmem:[#allocation5 + $0x74] ss:$8 sps:$4 sm:$0xff]   ;;  %v102_v24 = vld [vmem:[#allocation2] sm:$0xff] }
  0x3e   :  { %266 = vmatprep.mubr.bf16.mxu0 %v3416_v0  ;;  %v3014_v2 = vld [vmem:[#allocation5 + $0x70] ss:$8 sps:$4 sm:$0xff]   ;;  %234 = vmatprep.subr.bf16.mxu0 %v3012_v1  ;;  %v3015_v3 = vld [vmem:[#allocation5 + $0x64] ss:$8 sps:$4 sm:$0xff]   ;;  %v3017_v4 = vld [vmem:[#allocation5 + $0x60] ss:$8 sps:$4 sm:$0xff]  }
  0x3f   :  { %235 = vmatpush1.bf16.msra.mxu0 %v3014_v2  ;;  %v3018_v5 = vld [vmem:[#allocation5 + $0x54] ss:$8 sps:$4 sm:$0xff]   ;;  %v3020_v6 = vld [vmem:[#allocation5 + $0x50] ss:$8 sps:$4 sm:$0xff]   ;;  %v3021_v7 = vld [vmem:[#allocation5 + $0x44] ss:$8 sps:$4 sm:$0xff]  }
  0x40   :  { %236 = vmatprep.subr.bf16.mxu0 %v3015_v3  ;;  %v3023_v8 = vld [vmem:[#allocation5 + $0x40] ss:$8 sps:$4 sm:$0xff]   ;;  %v3024_v9 = vld [vmem:[#allocation5 + $0x34] ss:$8 sps:$4 sm:$0xff]   ;;  %v3026_v10 = vld [vmem:[#allocation5 + $0x30] ss:$8 sps:$4 sm:$0xff]  }
  0x41   :  { %v3027_v11 = vld [vmem:[#allocation5 + $0x24] ss:$8 sps:$4 sm:$0xff]   ;;  %v3036_v12 = vld [vmem:[#allocation7 + $0x74] ss:$8 sps:$4 sm:$0xff]   ;;  %v3038_v13 = vld [vmem:[#allocation7 + $0x70] ss:$8 sps:$4 sm:$0xff]  }
  0x42   :  { %v3029_v14 = vld [vmem:[#allocation5 + $0x20] ss:$8 sps:$4 sm:$0xff]   ;;  %599 = vmatprep.subr.bf16.mxu1 %v3036_v12  ;;  %v3039_v15 = vld [vmem:[#allocation7 + $0x64] ss:$8 sps:$4 sm:$0xff]   ;;  %v3030_v16 = vld [vmem:[#allocation5 + $0x14] ss:$8 sps:$4 sm:$0xff]  }
  0x43   :  { %237 = vmatpush1.bf16.msra.mxu0 %v3017_v4  ;;  %600 = vmatpush1.bf16.msra.mxu1 %v3038_v13  ;;  %v3041_v17 = vld [vmem:[#allocation7 + $0x60] ss:$8 sps:$4 sm:$0xff]   ;;  %v3042_v18 = vld [vmem:[#allocation7 + $0x54] ss:$8 sps:$4 sm:$0xff]   ;;  %v3032_v19 = vld [vmem:[#allocation5 + $0x10] ss:$8 sps:$4 sm:$0xff]  }
  0x44   :  { %238 = vmatprep.subr.bf16.mxu0 %v3018_v5  ;;  %601 = vmatprep.subr.bf16.mxu1 %v3039_v15  ;;  %v3033_v20 = vld [vmem:[#allocation5 + $0x4] ss:$8 sps:$4 sm:$0xff]   ;;  %v3044_v21 = vld [vmem:[#allocation7 + $0x50] ss:$8 sps:$4 sm:$0xff]   ;;  %v3035_v23 = vld [vmem:[#allocation5] ss:$8 sps:$4 sm:$0xff]  }
  0x45   :  { %v3045_v22 = vld [vmem:[#allocation7 + $0x44] ss:$8 sps:$4 sm:$0xff]   ;;  %v3047_v26 = vld [vmem:[#allocation7 + $0x40] ss:$8 sps:$4 sm:$0xff]   ;;  %v3048_v27 = vld [vmem:[#allocation7 + $0x34] ss:$8 sps:$4 sm:$0xff]  }
  0x46   :  { %v103_v25 = vld [vmem:[#allocation2 + $0x8] sm:$0xff]  ;;  %v3050_v29 = vld [vmem:[#allocation7 + $0x30] ss:$8 sps:$4 sm:$0xff]   ;;  %v3054_v34 = vld [vmem:[#allocation7 + $0x14] ss:$8 sps:$4 sm:$0xff]  }
  0x47   :  { %239 = vmatpush1.bf16.msra.mxu0 %v3020_v6  ;;  %602 = vmatpush1.bf16.msra.mxu1 %v3041_v17  ;;  %v118_v28 = vpack.c.bf16 %v103_v25, %v102_v24  ;;  %v3051_v30 = vld [vmem:[#allocation7 + $0x24] ss:$8 sps:$4 sm:$0xff]   ;;  %v104_v31 = vld [vmem:[#allocation2 + $0x10] sm:$0xff]  ;;  %v105_v32 = vld [vmem:[#allocation2 + $0x18] sm:$0xff] }
  0x48   :  { %240 = vmatprep.subr.bf16.mxu0 %v3021_v7  ;;  %603 = vmatprep.subr.bf16.mxu1 %v3042_v18  ;;  %v3053_v33 = vld [vmem:[#allocation7 + $0x20] ss:$8 sps:$4 sm:$0xff]   ;;  %v3056_v35 = vld [vmem:[#allocation7 + $0x10] ss:$8 sps:$4 sm:$0xff]   ;;  %v119_v36 = vpack.c.bf16 %v105_v32, %v104_v31  ;;  %v3057_v37 = vld [vmem:[#allocation7 + $0x4] ss:$8 sps:$4 sm:$0xff]  }
  0x49   :  { %v106_v38 = vld [vmem:[#allocation2 + $0x20] sm:$0xff]  ;;  %v107_v39 = vld [vmem:[#allocation2 + $0x28] sm:$0xff]  ;;  %v3060_v41 = vld [vmem:[#allocation7 + $0xf4] ss:$8 sps:$4 sm:$0xff]  }
  0x4a   :  { %v3059_v40 = vld [vmem:[#allocation7] ss:$8 sps:$4 sm:$0xff]   ;;  %v3062_v42 = vld [vmem:[#allocation7 + $0xf0] ss:$8 sps:$4 sm:$0xff]   ;;  %v120_v43 = vpack.c.bf16 %v107_v39, %v106_v38  ;;  %v3063_v44 = vld [vmem:[#allocation7 + $0xe4] ss:$8 sps:$4 sm:$0xff]  }
  0x4b   :  { %241 = vmatpush1.bf16.msra.mxu0 %v3023_v8  ;;  %604 = vmatpush1.bf16.msra.mxu1 %v3044_v21  ;;  %v108_v45 = vld [vmem:[#allocation2 + $0x30] sm:$0xff]  ;;  %v109_v46 = vld [vmem:[#allocation2 + $0x38] sm:$0xff]  ;;  %v3065_v47 = vld [vmem:[#allocation7 + $0xe0] ss:$8 sps:$4 sm:$0xff]  }
  0x4c   :  { %242 = vmatprep.subr.bf16.mxu0 %v3024_v9  ;;  %605 = vmatprep.subr.bf16.mxu1 %v3045_v22  ;;  %v3066_v48 = vld [vmem:[#allocation7 + $0xd4] ss:$8 sps:$4 sm:$0xff]   ;;  %v3068_v49 = vld [vmem:[#allocation7 + $0xd0] ss:$8 sps:$4 sm:$0xff]   ;;  %v121_v50 = vpack.c.bf16 %v109_v46, %v108_v45  ;;  %v3069_v51 = vld [vmem:[#allocation7 + $0xc4] ss:$8 sps:$4 sm:$0xff]  }
  0x4d   :  { %v110_v52 = vld [vmem:[#allocation2 + $0x40] sm:$0xff]  ;;  %v111_v53 = vld [vmem:[#allocation2 + $0x48] sm:$0xff]  ;;  %v3072_v55 = vld [vmem:[#allocation7 + $0xb4] ss:$8 sps:$4 sm:$0xff]  }
  0x4e   :  { %v3071_v54 = vld [vmem:[#allocation7 + $0xc0] ss:$8 sps:$4 sm:$0xff]   ;;  %v3074_v56 = vld [vmem:[#allocation7 + $0xb0] ss:$8 sps:$4 sm:$0xff]   ;;  %v122_v57 = vpack.c.bf16 %v111_v53, %v110_v52  ;;  %v3075_v4 = vld [vmem:[#allocation7 + $0xa4] ss:$8 sps:$4 sm:$0xff]  }
  0x4f   :  { %243 = vmatpush1.bf16.msra.mxu0 %v3026_v10  ;;  %606 = vmatpush1.bf16.msra.mxu1 %v3047_v26  ;;  %v112_v58 = vld [vmem:[#allocation2 + $0x50] sm:$0xff]  ;;  %v113_v59 = vld [vmem:[#allocation2 + $0x58] sm:$0xff]  ;;  %v114_v61 = vld [vmem:[#allocation2 + $0x60] sm:$0xff] }
  0x50   :  { %244 = vmatprep.subr.bf16.mxu0 %v3027_v11  ;;  %607 = vmatprep.subr.bf16.mxu1 %v3048_v27  ;;  %v123_v60 = vpack.c.bf16 %v113_v59, %v112_v58  ;;  %v115_v62 = vld [vmem:[#allocation2 + $0x68] sm:$0xff]  ;;  %v116_v1 = vld [vmem:[#allocation2 + $0x70] sm:$0xff]  ;;  %v117_v2 = vld [vmem:[#allocation2 + $0x78] sm:$0xff] }
  0x51   :  { %v124_v63 = vpack.c.bf16 %v115_v62, %v114_v61  ;;  %v125_v3 = vpack.c.bf16 %v117_v2, %v116_v1  ;;  %v3077_v5 = vld [vmem:[#allocation7 + $0xa0] ss:$8 sps:$4 sm:$0xff]   ;;  %v3078_v6 = vld [vmem:[#allocation7 + $0x94] ss:$8 sps:$4 sm:$0xff]   ;;  %v3080_v7 = vld [vmem:[#allocation7 + $0x90] ss:$8 sps:$4 sm:$0xff]  }
  0x52   :  { %v3081_v8 = vld [vmem:[#allocation7 + $0x84] ss:$8 sps:$4 sm:$0xff]   ;;  %v3083_v9 = vld [vmem:[#allocation7 + $0x80] ss:$8 sps:$4 sm:$0xff]   ;;  %v3084_v10 = vld [vmem:[#allocation8 + $0x70] ss:$8 sps:$4 sm:$0xff]  }
  0x53   :  { %245 = vmatpush1.bf16.msra.mxu0 %v3029_v14  ;;  %608 = vmatpush1.bf16.msra.mxu1 %v3050_v29  ;;  %v3086_v11 = vld [vmem:[#allocation8 + $0x74] ss:$8 sps:$4 sm:$0xff]   ;;  %v3089_v12 = vld [vmem:[#allocation8 + $0x64] ss:$8 sps:$4 sm:$0xff]   ;;  %v3087_v13 = vld [vmem:[#allocation8 + $0x60] ss:$8 sps:$4 sm:$0xff]  }
  0x54   :  { %246 = vmatprep.subr.bf16.mxu0 %v3030_v16  ;;  %609 = vmatprep.subr.bf16.mxu1 %v3051_v30  ;;  %v3092_v14 = vld [vmem:[#allocation8 + $0x54] ss:$8 sps:$4 sm:$0xff]   ;;  %v3090_v15 = vld [vmem:[#allocation8 + $0x50] ss:$8 sps:$4 sm:$0xff]   ;;  %v3095_v16 = vld [vmem:[#allocation8 + $0x44] ss:$8 sps:$4 sm:$0xff]  }
  0x55   :  { %v3093_v17 = vld [vmem:[#allocation8 + $0x40] ss:$8 sps:$4 sm:$0xff]   ;;  %v3098_v18 = vld [vmem:[#allocation8 + $0x34] ss:$8 sps:$4 sm:$0xff]   ;;  %v3107_v24 = vld [vmem:[#allocation8 + $0x4] ss:$8 sps:$4 sm:$0xff]  }
  0x56   :  { %v3099_v21 = vld [vmem:[#allocation8 + $0x20] ss:$8 sps:$4 sm:$0xff]   ;;  %v3104_v22 = vld [vmem:[#allocation8 + $0x14] ss:$8 sps:$4 sm:$0xff]   ;;  %v3108_v27 = vld [vmem:[#allocation8 + $0xf0] ss:$8 sps:$4 sm:$0xff]  }
  0x57   :  { %247 = vmatpush1.bf16.msra.mxu0 %v3032_v19  ;;  %610 = vmatpush1.bf16.msra.mxu1 %v3053_v33  ;;  %v3096_v19 = vld [vmem:[#allocation8 + $0x30] ss:$8 sps:$4 sm:$0xff]   ;;  %v3105_v25 = vld [vmem:[#allocation8] ss:$8 sps:$4 sm:$0xff]   ;;  %v3110_v26 = vld [vmem:[#allocation8 + $0xf4] ss:$8 sps:$4 sm:$0xff]  }
  0x58   :  { %248 = vmatprep.subr.bf16.mxu0 %v3033_v20  ;;  %611 = vmatprep.subr.bf16.mxu1 %v3054_v34  ;;  %v3101_v20 = vld [vmem:[#allocation8 + $0x24] ss:$8 sps:$4 sm:$0xff]   ;;  %v3111_v29 = vld [vmem:[#allocation8 + $0xe0] ss:$8 sps:$4 sm:$0xff]   ;;  %v3116_v30 = vld [vmem:[#allocation8 + $0xd4] ss:$8 sps:$4 sm:$0xff]  }
  0x59   :  { %v3114_v31 = vld [vmem:[#allocation8 + $0xd0] ss:$8 sps:$4 sm:$0xff]   ;;  %v3119_v32 = vld [vmem:[#allocation8 + $0xc4] ss:$8 sps:$4 sm:$0xff]   ;;  %v3117_v33 = vld [vmem:[#allocation8 + $0xc0] ss:$8 sps:$4 sm:$0xff]  }
  0x5a   :  { %v3122_v34 = vld [vmem:[#allocation8 + $0xb4] ss:$8 sps:$4 sm:$0xff]  }
  0x5b   :  { %249 = vmatpush1.bf16.msra.mxu0 %v3035_v23  ;;  %612 = vmatpush1.bf16.msra.mxu1 %v3056_v35  ;;  %v3102_v23 = vld [vmem:[#allocation8 + $0x10] ss:$8 sps:$4 sm:$0xff]  }
  0x5c   :  { %613 = vmatprep.subr.bf16.mxu1 %v3057_v37  ;;  %964 = vmatprep.subr.bf16.mxu0 %v3086_v11  ;;  %v3120_v35 = vld [vmem:[#allocation8 + $0xb0] ss:$8 sps:$4 sm:$0xff]  }
  0x5e   :  { %267 = vmatmul.mubr.bf16.vlgmr.msra.gmra.mxu0 %v118_v28  ;;  %v3113_v28 = vld [vmem:[#allocation8 + $0xe4] ss:$8 sps:$4 sm:$0xff]  }
  0x5f   :  { %276 = vmatprep.mubr.bf16.mxu0 %v3416_v0  ;;  %614 = vmatpush1.bf16.msra.mxu1 %v3059_v40  ;;  %v142_v40 = vld [vmem:[%s3847_s2] sm:$0x3] }
  0x60   :  { %615 = vmatprep.subr.bf16.mxu1 %v3060_v41  ;;  %965 = vmatpush1.bf16.msra.mxu0 %v3084_v10 }
  0x61   :  { %966 = vmatprep.subr.bf16.mxu0 %v3089_v12 }
  0x63   :  { %616 = vmatpush2.bf16.msra.mxu1 %v3062_v42 }
  0x64   :  { %617 = vmatprep.subr.bf16.mxu1 %v3063_v44  ;;  %967 = vmatpush1.bf16.msra.mxu0 %v3087_v13 }
  0x65   :  { %968 = vmatprep.subr.bf16.mxu0 %v3092_v14 }
  0x66   :  { %277 = vmatmul.mubr.bf16.gmra.mxu0 %v119_v36  ;;  %v144_v36 = vlaneseq }
  0x67   :  { %286 = vmatprep.mubr.bf16.mxu0 %v3416_v0  ;;  %618 = vmatpush2.bf16.msra.mxu1 %v3065_v47 }
  0x68   :  { %619 = vmatprep.subr.bf16.mxu1 %v3066_v48  ;;  %969 = vmatpush1.bf16.msra.mxu0 %v3090_v15  ;;  %v145_v37 = vshrl.u32 %v144_v36, 7 }
  0x69   :  { %970 = vmatprep.subr.bf16.mxu0 %v3095_v16 }
  0x6a   :  { %v3503_v38 = vsub.s32 1, %v145_v37  ;;  %v3505_v39 = vsub.s32 0, %v145_v37 }
  0x6b   :  { %620 = vmatpush2.bf16.msra.mxu1 %v3068_v49 }
  0x6c   :  { %621 = vmatprep.subr.bf16.mxu1 %v3069_v51  ;;  %971 = vmatpush1.bf16.msra.mxu0 %v3093_v17  ;;  %v3511_v42 = vrot.slane %v142_v40, %v3503_v38 }
  0x6d   :  { %972 = vmatprep.subr.bf16.mxu0 %v3098_v18 }
  0x6e   :  { %287 = vmatmul.mubr.bf16.gmra.mxu0 %v120_v43  ;;  %v3514_v43 = vrot.slane %v142_v40, %v3505_v39 }
  0x6f   :  { %296 = vmatprep.mubr.bf16.mxu0 %v3416_v0  ;;  %622 = vmatpush2.bf16.msra.mxu1 %v3071_v54 }
  0x70   :  { %623 = vmatprep.subr.bf16.mxu1 %v3072_v55  ;;  %973 = vmatpush1.bf16.msra.mxu0 %v3096_v19 }
  0x71   :  { %974 = vmatprep.subr.bf16.mxu0 %v3101_v20 }
  0x73   :  { %624 = vmatpush2.bf16.msra.mxu1 %v3074_v56 }
  0x74   :  { %625 = vmatprep.subr.bf16.mxu1 %v3075_v4  ;;  %975 = vmatpush1.bf16.msra.mxu0 %v3099_v21 }
  0x75   :  { %976 = vmatprep.subr.bf16.mxu0 %v3104_v22 }
  0x76   :  { %297 = vmatmul.mubr.bf16.gmra.mxu0 %v121_v50 }
  0x77   :  { %306 = vmatprep.mubr.bf16.mxu0 %v3416_v0  ;;  %626 = vmatpush2.bf16.msra.mxu1 %v3077_v5 }
  0x78   :  { %627 = vmatprep.subr.bf16.mxu1 %v3078_v6  ;;  %977 = vmatpush1.bf16.msra.mxu0 %v3102_v23 }
  0x79   :  { %978 = vmatprep.subr.bf16.mxu0 %v3107_v24 }
  0x7b   :  { %628 = vmatpush2.bf16.msra.mxu1 %v3080_v7 }
  0x7c   :  { %629 = vmatprep.subr.bf16.mxu1 %v3081_v8  ;;  %979 = vmatpush1.bf16.msra.mxu0 %v3105_v25 }
  0x7d   :  { %980 = vmatprep.subr.bf16.mxu0 %v3110_v26 }
  0x7e   :  { %307 = vmatmul.mubr.bf16.gmra.mxu0 %v122_v57 }
  0x7f   :  { %316 = vmatprep.mubr.bf16.mxu0 %v3416_v0  ;;  %630 = vmatpush2.bf16.msra.mxu1 %v3083_v9 }
  0x80   :  { %981 = vmatpush2.bf16.msra.mxu0 %v3108_v27 }
  0x81   :  { %982 = vmatprep.subr.bf16.mxu0 %v3113_v28 }
  0x84   :  { %983 = vmatpush2.bf16.msra.mxu0 %v3111_v29 }
  0x85   :  { %984 = vmatprep.subr.bf16.mxu0 %v3116_v30 }
  0x86   :  { %317 = vmatmul.mubr.bf16.gmra.mxu0 %v123_v60 }
  0x87   :  { %326 = vmatprep.mubr.bf16.mxu0 %v3416_v0 }
  0x88   :  { %985 = vmatpush2.bf16.msra.mxu0 %v3114_v31 }
  0x89   :  { %986 = vmatprep.subr.bf16.mxu0 %v3119_v32 }
  0x8c   :  { %987 = vmatpush2.bf16.msra.mxu0 %v3117_v33 }
  0x8d   :  { %988 = vmatprep.subr.bf16.mxu0 %v3122_v34 }
  0x8e   :  { %327 = vmatmul.mubr.bf16.gmra.mxu0 %v124_v63 }
  0x8f   :  { %336 = vmatprep.mubr.bf16.mxu0 %v3416_v0 }
  0x90   :  { %989 = vmatpush2.bf16.msra.mxu0 %v3120_v35 }
  0x96   :  { %337 = vmatmul.mubr.bf16.gmra.mxu0 %v125_v3 }
 0x11e   :  { %v268_v41 = vpop.f32.mrf.mxu0 }
 0x11f   :  { %v269_v48 = vadd.f32 %v268_v41, %v3514_v43 }
 0x120   :  { %v270_v44 = vpop.f32.mrf.mxu0 }
 0x121   :  { %v271_v46 = vadd.f32 %v270_v44, %v3511_v42  ;;  %v347_v55 = vmax.f32 %v269_v48, 0.0 }
 0x122   :  { %v272_v45 = vpop.f32.mrf.mxu0 }
 0x123   :  { %v273_v47 = vadd.f32 %v272_v45, %v3514_v43  ;;  %v348_v53 = vmax.f32 %v271_v46, 0.0 }
 0x124   :  { %v274_v49 = vpop.f32.mrf.mxu0 }
 0x125   :  { %v275_v50 = vadd.f32 %v274_v49, %v3511_v42  ;;  %v349_v51 = vmax.f32 %v273_v47, 0.0 }
 0x126   :  { %v278_v52 = vpop.f32.mrf.mxu0 }
 0x127   :  { %v350_v54 = vmax.f32 %v275_v50, 0.0  ;;  %v379_v58 = vpack.c.bf16 %v349_v51, %v347_v55  ;;  %v279_v62 = vadd.f32 %v278_v52, %v3514_v43 }
 0x128   :  { %v280_v56 = vpop.f32.mrf.mxu0 }
 0x129   :  { %v380_v57 = vpack.c.bf16 %v350_v54, %v348_v53  ;;  %v281_v60 = vadd.f32 %v280_v56, %v3511_v42  ;;  %v351_v6 = vmax.f32 %v279_v62, 0.0 }
 0x12a   :  { %v282_v59 = vpop.f32.mrf.mxu0 }
 0x12b   :  { %v283_v61 = vadd.f32 %v282_v59, %v3514_v43  ;;  %631 = vmatprep.mubr.bf16.mxu1 %v380_v57  ;;  %v352_v4 = vmax.f32 %v281_v60, 0.0 }
 0x12c   :  { %v284_v63 = vpop.f32.mrf.mxu0  ;;  %632 = vmatmul.mubr.bf16.vlgmr.msra.gmra.mxu1 %v379_v58 }
 0x12d   :  { %v285_v1 = vadd.f32 %v284_v63, %v3511_v42  ;;  %v353_v2 = vmax.f32 %v283_v61, 0.0 }
 0x12e   :  { %v288_v3 = vpop.f32.mrf.mxu0 }
 0x12f   :  { %v354_v5 = vmax.f32 %v285_v1, 0.0  ;;  %v381_v9 = vpack.c.bf16 %v353_v2, %v351_v6  ;;  %v289_v13 = vadd.f32 %v288_v3, %v3514_v43 }
 0x130   :  { %v290_v7 = vpop.f32.mrf.mxu0 }
 0x131   :  { %v382_v8 = vpack.c.bf16 %v354_v5, %v352_v4  ;;  %v291_v11 = vadd.f32 %v290_v7, %v3511_v42  ;;  %v355_v20 = vmax.f32 %v289_v13, 0.0 }
 0x132   :  { %v292_v10 = vpop.f32.mrf.mxu0 }
 0x133   :  { %v293_v12 = vadd.f32 %v292_v10, %v3514_v43  ;;  %641 = vmatprep.mubr.bf16.mxu1 %v382_v8  ;;  %v356_v18 = vmax.f32 %v291_v11, 0.0 }
 0x134   :  { %v294_v14 = vpop.f32.mrf.mxu0  ;;  %642 = vmatmul.mubr.bf16.gmra.mxu1 %v381_v9 }
 0x135   :  { %v295_v15 = vadd.f32 %v294_v14, %v3511_v42  ;;  %v357_v16 = vmax.f32 %v293_v12, 0.0 }
 0x136   :  { %v298_v17 = vpop.f32.mrf.mxu0 }
 0x137   :  { %v358_v19 = vmax.f32 %v295_v15, 0.0  ;;  %v383_v23 = vpack.c.bf16 %v357_v16, %v355_v20  ;;  %v299_v27 = vadd.f32 %v298_v17, %v3514_v43 }
 0x138   :  { %v300_v21 = vpop.f32.mrf.mxu0 }
 0x139   :  { %v384_v22 = vpack.c.bf16 %v358_v19, %v356_v18  ;;  %v301_v25 = vadd.f32 %v300_v21, %v3511_v42  ;;  %v359_v34 = vmax.f32 %v299_v27, 0.0 }
 0x13a   :  { %v302_v24 = vpop.f32.mrf.mxu0 }
 0x13b   :  { %v303_v26 = vadd.f32 %v302_v24, %v3514_v43  ;;  %651 = vmatprep.mubr.bf16.mxu1 %v384_v22  ;;  %v360_v32 = vmax.f32 %v301_v25, 0.0 }
 0x13c   :  { %v304_v28 = vpop.f32.mrf.mxu0  ;;  %652 = vmatmul.mubr.bf16.gmra.mxu1 %v383_v23 }
 0x13d   :  { %v305_v29 = vadd.f32 %v304_v28, %v3511_v42  ;;  %v361_v30 = vmax.f32 %v303_v26, 0.0 }
 0x13e   :  { %v308_v31 = vpop.f32.mrf.mxu0 }
 0x13f   :  { %v362_v33 = vmax.f32 %v305_v29, 0.0  ;;  %v385_v37 = vpack.c.bf16 %v361_v30, %v359_v34  ;;  %v309_v45 = vadd.f32 %v308_v31, %v3514_v43  ;;  %v3123_v34 = vld [vmem:[#allocation8 + $0xa0] ss:$8 sps:$4 sm:$0xff]  }
 0x140   :  { %v310_v35 = vpop.f32.mrf.mxu0 }
 0x141   :  { %v386_v36 = vpack.c.bf16 %v362_v33, %v360_v32  ;;  %v311_v41 = vadd.f32 %v310_v35, %v3511_v42  ;;  %v363_v52 = vmax.f32 %v309_v45, 0.0  ;;  %v3125_v33 = vld [vmem:[#allocation8 + $0xa4] ss:$8 sps:$4 sm:$0xff]   ;;  %v3128_v35 = vld [vmem:[#allocation8 + $0x94] ss:$8 sps:$4 sm:$0xff]  }
 0x142   :  { %v312_v40 = vpop.f32.mrf.mxu0  ;;  %990 = vmatprep.subr.bf16.mxu0 %v3125_v33  ;;  %v3274_v33 = vld [vmem:[#allocation5 + $0x50] ss:$8 sps:$4 sm:$0xff]  }
 0x143   :  { %v313_v44 = vadd.f32 %v312_v40, %v3514_v43  ;;  %661 = vmatprep.mubr.bf16.mxu1 %v386_v36  ;;  %v364_v50 = vmax.f32 %v311_v41, 0.0  ;;  %991 = vmatpush2.bf16.msra.mxu0 %v3123_v34  ;;  %v3126_v36 = vld [vmem:[#allocation8 + $0x90] ss:$8 sps:$4 sm:$0xff]   ;;  %v427_v40 = vld [vmem:[%s3849_s4] sm:$0x3] }
 0x144   :  { %v314_v46 = vpop.f32.mrf.mxu0  ;;  %662 = vmatmul.mubr.bf16.gmra.mxu1 %v385_v37  ;;  %992 = vmatprep.subr.bf16.mxu0 %v3128_v35  ;;  %v3129_v37 = vld [vmem:[#allocation8 + $0x80] ss:$8 sps:$4 sm:$0xff]   ;;  %v3555_v45 = vrot.slane %v427_v40, %v3505_v39 }
 0x145   :  { %v315_v47 = vadd.f32 %v314_v46, %v3511_v42  ;;  %v365_v48 = vmax.f32 %v313_v44, 0.0  ;;  %v3552_v44 = vrot.slane %v427_v40, %v3503_v38 }
 0x146   :  { %v318_v49 = vpop.f32.mrf.mxu0 }
 0x147   :  { %v366_v51 = vmax.f32 %v315_v47, 0.0  ;;  %v387_v55 = vpack.c.bf16 %v365_v48, %v363_v52  ;;  %v319_v59 = vadd.f32 %v318_v49, %v3514_v43  ;;  %993 = vmatpush2.bf16.msra.mxu0 %v3126_v36  ;;  %v3141_v52 = vld [vmem:[#allocation10 + $0x78] sm:$0xff]   ;;  %v3275_v36 = vld [vmem:[#allocation5 + $0x44] ss:$8 sps:$4 sm:$0xff]  }
 0x148   :  { %v320_v53 = vpop.f32.mrf.mxu0  ;;  %2857 = vmatprep.subr.bf16.mxu1 %v3141_v52  ;;  %v3134_v52 = vld [vmem:[#allocation5 + $0x24] ss:$8 sps:$4 sm:$0xff]  }
 0x149   :  { %v388_v54 = vpack.c.bf16 %v366_v51, %v364_v50  ;;  %v321_v57 = vadd.f32 %v320_v53, %v3511_v42  ;;  %v367_v3 = vmax.f32 %v319_v59, 0.0  ;;  %v3142_v53 = vld [vmem:[#allocation10 + $0x38] sm:$0xff]  }
 0x14a   :  { %v322_v56 = vpop.f32.mrf.mxu0  ;;  %2858 = vmatpush3.bf16.msra.mxu1 %v3142_v53 }
 0x14b   :  { %v323_v58 = vadd.f32 %v322_v56, %v3514_v43  ;;  %671 = vmatprep.mubr.bf16.mxu1 %v388_v54  ;;  %v368_v1 = vmax.f32 %v321_v57, 0.0  ;;  %v3143_v54 = vld [vmem:[#allocation10 + $0x70] sm:$0xff]  }
 0x14c   :  { %v324_v60 = vpop.f32.mrf.mxu0  ;;  %672 = vmatmul.mubr.bf16.gmra.mxu1 %v387_v55  ;;  %2859 = vmatprep.subr.bf16.mxu1 %v3143_v54 }
 0x14d   :  { %v325_v61 = vadd.f32 %v324_v60, %v3511_v42  ;;  %v369_v62 = vmax.f32 %v323_v58, 0.0  ;;  %v3144_v60 = vld [vmem:[#allocation10 + $0x30] sm:$0xff]  }
 0x14e   :  { %v328_v63 = vpop.f32.mrf.mxu0  ;;  %2860 = vmatpush3.bf16.msra.mxu1 %v3144_v60  ;;  %v3132_v60 = vld [vmem:[#allocation5 + $0x20] ss:$8 sps:$4 sm:$0xff]  }
 0x14f   :  { %v370_v2 = vmax.f32 %v325_v61, 0.0  ;;  %v389_v6 = vpack.c.bf16 %v369_v62, %v367_v3  ;;  %v329_v10 = vadd.f32 %v328_v63, %v3514_v43  ;;  %v3145_v63 = vld [vmem:[#allocation10 + $0x68] sm:$0xff]  }
 0x150   :  { %v330_v4 = vpop.f32.mrf.mxu0  ;;  %2861 = vmatprep.subr.bf16.mxu1 %v3145_v63  ;;  %v3137_v63 = vld [vmem:[#allocation5 + $0x14] ss:$8 sps:$4 sm:$0xff]  }
 0x151   :  { %v390_v5 = vpack.c.bf16 %v370_v2, %v368_v1  ;;  %v331_v8 = vadd.f32 %v330_v4, %v3511_v42  ;;  %v371_v17 = vmax.f32 %v329_v10, 0.0 }
 0x152   :  { %v332_v7 = vpop.f32.mrf.mxu0 }
 0x153   :  { %v333_v9 = vadd.f32 %v332_v7, %v3514_v43  ;;  %681 = vmatprep.mubr.bf16.mxu1 %v390_v5  ;;  %v372_v15 = vmax.f32 %v331_v8, 0.0 }
 0x154   :  { %v334_v11 = vpop.f32.mrf.mxu0  ;;  %682 = vmatmul.mubr.bf16.gmra.mxu1 %v389_v6  ;;  %v3146_v6 = vld [vmem:[#allocation10 + $0x28] sm:$0xff]  }
 0x155   :  { %v335_v12 = vadd.f32 %v334_v11, %v3511_v42  ;;  %v373_v13 = vmax.f32 %v333_v9, 0.0  ;;  %v3147_v9 = vld [vmem:[#allocation10 + $0x60] sm:$0xff]   ;;  %v3270_v11 = vld [vmem:[#allocation5 + $0x70] ss:$8 sps:$4 sm:$0xff]   ;;  %2862 = vmatpush3.bf16.msra.mxu1 %v3146_v6 }
 0x156   :  { %v338_v14 = vpop.f32.mrf.mxu0  ;;  %2863 = vmatprep.subr.bf16.mxu1 %v3147_v9  ;;  %v3135_v6 = vld [vmem:[#allocation5 + $0x10] ss:$8 sps:$4 sm:$0xff]   ;;  %v3140_v9 = vld [vmem:[#allocation5 + $0x4] ss:$8 sps:$4 sm:$0xff]  }
 0x157   :  { %v374_v16 = vmax.f32 %v335_v12, 0.0  ;;  %v391_v20 = vpack.c.bf16 %v373_v13, %v371_v17  ;;  %v339_v24 = vadd.f32 %v338_v14, %v3514_v43  ;;  %v3271_v14 = vld [vmem:[#allocation5 + $0x64] ss:$8 sps:$4 sm:$0xff]  }
 0x158   :  { %v340_v18 = vpop.f32.mrf.mxu0  ;;  %v3148_v17 = vld [vmem:[#allocation10 + $0x20] sm:$0xff]  }
 0x159   :  { %v392_v19 = vpack.c.bf16 %v374_v16, %v372_v15  ;;  %v341_v22 = vadd.f32 %v340_v18, %v3511_v42  ;;  %v375_v30 = vmax.f32 %v339_v24, 0.0  ;;  %2864 = vmatpush3.bf16.msra.mxu1 %v3148_v17 }
 0x15a   :  { %v342_v21 = vpop.f32.mrf.mxu0 }
 0x15b   :  { %v343_v23 = vadd.f32 %v342_v21, %v3514_v43  ;;  %691 = vmatprep.mubr.bf16.mxu1 %v392_v19  ;;  %v376_v28 = vmax.f32 %v341_v22, 0.0  ;;  %v3131_v43 = vld [vmem:[#allocation8 + $0x84] ss:$8 sps:$4 sm:$0xff]   ;;  %v3272_v22 = vld [vmem:[#allocation5 + $0x60] ss:$8 sps:$4 sm:$0xff]  }
 0x15c   :  { %v344_v25 = vpop.f32.mrf.mxu0  ;;  %692 = vmatmul.mubr.bf16.gmra.mxu1 %v391_v20  ;;  %994 = vmatprep.subr.bf16.mxu0 %v3131_v43  ;;  %v3149_v20 = vld [vmem:[#allocation10 + $0x58] sm:$0xff]  }
 0x15d   :  { %v345_v26 = vadd.f32 %v344_v25, %v3511_v42  ;;  %v377_v27 = vmax.f32 %v343_v23, 0.0  ;;  %995 = vmatpush2.bf16.msra.mxu0 %v3129_v37  ;;  %v3269_v42 = vld [vmem:[#allocation5 + $0x74] ss:$8 sps:$4 sm:$0xff]   ;;  %2865 = vmatprep.subr.bf16.mxu1 %v3149_v20 }
 0x15e   :  { %1505 = vmatprep.subr.bf16.mxu0 %v3269_v42  ;;  %v3273_v25 = vld [vmem:[#allocation5 + $0x54] ss:$8 sps:$4 sm:$0xff]  }
 0x15f   :  { %v378_v29 = vmax.f32 %v345_v26, 0.0  ;;  %v393_v32 = vpack.c.bf16 %v377_v27, %v375_v30  ;;  %v3152_v42 = vld [vmem:[#allocation10 + $0x10] sm:$0xff]  }
 0x161   :  { %v394_v31 = vpack.c.bf16 %v378_v29, %v376_v28  ;;  %v3150_v28 = vld [vmem:[#allocation10 + $0x18] sm:$0xff]  }
 0x162   :  { %2866 = vmatpush3.bf16.msra.mxu1 %v3150_v28 }
 0x163   :  { %701 = vmatprep.mubr.bf16.mxu1 %v394_v31  ;;  %v3151_v31 = vld [vmem:[#allocation10 + $0x50] sm:$0xff]  }
 0x164   :  { %702 = vmatmul.mubr.bf16.gmra.mxu1 %v393_v32  ;;  %2867 = vmatprep.subr.bf16.mxu1 %v3151_v31 }
 0x166   :  { %2868 = vmatpush3.bf16.msra.mxu1 %v3152_v42 }
 0x1ec   :  { %v633_v41 = vpop.f32.mrf.mxu1 }
 0x1ed   :  { %v634_v50 = vadd.f32 %v633_v41, %v3555_v45 }
 0x1ee   :  { %v635_v46 = vpop.f32.mrf.mxu1 }
 0x1ef   :  { %v636_v48 = vadd.f32 %v635_v46, %v3552_v44  ;;  %v712_v61 = vmax.f32 %v634_v50, 0.0  ;;  %v3153_v46 = vld [vmem:[#allocation10 + $0x48] sm:$0xff]  }
 0x1f0   :  { %v637_v47 = vpop.f32.mrf.mxu1  ;;  %2869 = vmatprep.subr.bf16.mxu1 %v3153_v46 }
 0x1f1   :  { %v638_v49 = vadd.f32 %v637_v47, %v3555_v45  ;;  %v713_v58 = vmax.f32 %v636_v48, 0.0  ;;  %v3276_v48 = vld [vmem:[#allocation5 + $0x40] ss:$8 sps:$4 sm:$0xff]  }
 0x1f2   :  { %v639_v51 = vpop.f32.mrf.mxu1 }
 0x1f3   :  { %v640_v55 = vadd.f32 %v639_v51, %v3552_v44  ;;  %v714_v56 = vmax.f32 %v638_v49, 0.0  ;;  %v3277_v51 = vld [vmem:[#allocation5 + $0x34] ss:$8 sps:$4 sm:$0xff]  }
 0x1f4   :  { %v643_v57 = vpop.f32.mrf.mxu1 }
 0x1f5   :  { %v715_v59 = vmax.f32 %v640_v55, 0.0  ;;  %v744_v2 = vpack.c.bf16 %v714_v56, %v712_v61  ;;  %v644_v7 = vadd.f32 %v643_v57, %v3555_v45  ;;  %v3154_v55 = vld [vmem:[#allocation10 + $0x8] sm:$0xff]  }
 0x1f6   :  { %v645_v62 = vpop.f32.mrf.mxu1  ;;  %2870 = vmatpush3.bf16.msra.mxu1 %v3154_v55 }
 0x1f7   :  { %v745_v1 = vpack.c.bf16 %v715_v59, %v713_v58  ;;  %v646_v4 = vadd.f32 %v645_v62, %v3552_v44  ;;  %v716_v18 = vmax.f32 %v644_v7, 0.0  ;;  %v3278_v59 = vld [vmem:[#allocation5 + $0x30] ss:$8 sps:$4 sm:$0xff]  }
 0x1f8   :  { %v647_v3 = vpop.f32.mrf.mxu1 }
 0x1f9   :  { %v648_v5 = vadd.f32 %v647_v3, %v3555_v45  ;;  %996 = vmatprep.mubr.bf16.mxu0 %v745_v1  ;;  %v717_v15 = vmax.f32 %v646_v4, 0.0 }
 0x1fa   :  { %v649_v8 = vpop.f32.mrf.mxu1  ;;  %997 = vmatmul.mubr.bf16.vlgmr.msra.gmra.mxu0 %v744_v2 }
 0x1fb   :  { %v650_v10 = vadd.f32 %v649_v8, %v3552_v44  ;;  %1506 = vmatpush1.bf16.msra.mxu0 %v3270_v11  ;;  %v718_v12 = vmax.f32 %v648_v5, 0.0 }
 0x1fc   :  { %v653_v13 = vpop.f32.mrf.mxu1  ;;  %1507 = vmatprep.subr.bf16.mxu0 %v3271_v14 }
 0x1fd   :  { %v719_v16 = vmax.f32 %v650_v10, 0.0  ;;  %v746_v23 = vpack.c.bf16 %v718_v12, %v716_v18  ;;  %v654_v29 = vadd.f32 %v653_v13, %v3555_v45 }
 0x1fe   :  { %v655_v19 = vpop.f32.mrf.mxu1 }
 0x1ff   :  { %v747_v21 = vpack.c.bf16 %v719_v16, %v717_v15  ;;  %1508 = vmatpush1.bf16.msra.mxu0 %v3272_v22  ;;  %v656_v26 = vadd.f32 %v655_v19, %v3552_v44  ;;  %v720_v40 = vmax.f32 %v654_v29, 0.0  ;;  %v3138_v15 = vld [vmem:[#allocation5] ss:$8 sps:$4 sm:$0xff]  }
 0x200   :  { %v657_v24 = vpop.f32.mrf.mxu1  ;;  %1509 = vmatprep.subr.bf16.mxu0 %v3273_v25 }
 0x201   :  { %v658_v27 = vadd.f32 %v657_v24, %v3555_v45  ;;  %1006 = vmatprep.mubr.bf16.mxu0 %v747_v21  ;;  %v721_v43 = vmax.f32 %v656_v26, 0.0 }
 0x202   :  { %v659_v30 = vpop.f32.mrf.mxu1  ;;  %1007 = vmatmul.mubr.bf16.gmra.mxu0 %v746_v23 }
 0x203   :  { %v660_v32 = vadd.f32 %v659_v30, %v3552_v44  ;;  %1510 = vmatpush1.bf16.msra.mxu0 %v3274_v33  ;;  %v722_v34 = vmax.f32 %v658_v27, 0.0 }
 0x204   :  { %v663_v35 = vpop.f32.mrf.mxu1  ;;  %1511 = vmatprep.subr.bf16.mxu0 %v3275_v36 }
 0x205   :  { %v723_v37 = vmax.f32 %v660_v32, 0.0  ;;  %v748_v49 = vpack.c.bf16 %v722_v34, %v720_v40  ;;  %v664_v56 = vadd.f32 %v663_v35, %v3555_v45 }
 0x206   :  { %v665_v41 = vpop.f32.mrf.mxu1 }
 0x207   :  { %v749_v47 = vpack.c.bf16 %v723_v37, %v721_v43  ;;  %1512 = vmatpush1.bf16.msra.mxu0 %v3276_v48  ;;  %v666_v53 = vadd.f32 %v665_v41, %v3552_v44  ;;  %v724_v3 = vmax.f32 %v664_v56, 0.0 }
 0x208   :  { %v667_v50 = vpop.f32.mrf.mxu1  ;;  %1513 = vmatprep.subr.bf16.mxu0 %v3277_v51 }
 0x209   :  { %v668_v54 = vadd.f32 %v667_v50, %v3555_v45  ;;  %1016 = vmatprep.mubr.bf16.mxu0 %v749_v47  ;;  %v725_v1 = vmax.f32 %v666_v53, 0.0 }
 0x20a   :  { %v669_v57 = vpop.f32.mrf.mxu1  ;;  %1017 = vmatmul.mubr.bf16.gmra.mxu0 %v748_v49 }
 0x20b   :  { %v670_v58 = vadd.f32 %v669_v57, %v3552_v44  ;;  %1514 = vmatpush1.bf16.msra.mxu0 %v3278_v59  ;;  %v726_v61 = vmax.f32 %v668_v54, 0.0 }
 0x20c   :  { %v673_v62 = vpop.f32.mrf.mxu1  ;;  %1515 = vmatprep.subr.bf16.mxu0 %v3134_v52 }
 0x20d   :  { %v727_v2 = vmax.f32 %v670_v58, 0.0  ;;  %v750_v7 = vpack.c.bf16 %v726_v61, %v724_v3  ;;  %v674_v12 = vadd.f32 %v673_v62, %v3555_v45 }
 0x20e   :  { %v675_v4 = vpop.f32.mrf.mxu1 }
 0x20f   :  { %v751_v5 = vpack.c.bf16 %v727_v2, %v725_v1  ;;  %1516 = vmatpush1.bf16.msra.mxu0 %v3132_v60  ;;  %v676_v10 = vadd.f32 %v675_v4, %v3552_v44  ;;  %v728_v20 = vmax.f32 %v674_v12, 0.0  ;;  %v3156_v12 = vld [vmem:[#allocation10] sm:$0xff]  }
 0x210   :  { %v677_v8 = vpop.f32.mrf.mxu1  ;;  %1517 = vmatprep.subr.bf16.mxu0 %v3137_v63 }
 0x211   :  { %v678_v11 = vadd.f32 %v677_v8, %v3555_v45  ;;  %1026 = vmatprep.mubr.bf16.mxu0 %v751_v5  ;;  %v729_v18 = vmax.f32 %v676_v10, 0.0  ;;  %v1373_v5 = vld [vmem:[#allocation2 + $0x80] sm:$0xff]  ;;  %v1376_v8 = vld [vmem:[#allocation2 + $0x98] sm:$0xff] }
 0x212   :  { %v679_v13 = vpop.f32.mrf.mxu1  ;;  %1027 = vmatmul.mubr.bf16.gmra.mxu0 %v750_v7  ;;  %v1377_v10 = vld [vmem:[#allocation2 + $0xa0] sm:$0xff] }
 0x213   :  { %v680_v14 = vadd.f32 %v679_v13, %v3552_v44  ;;  %1518 = vmatpush1.bf16.msra.mxu0 %v3135_v6  ;;  %v730_v16 = vmax.f32 %v678_v11, 0.0  ;;  %v1374_v6 = vld [vmem:[#allocation2 + $0x88] sm:$0xff] }
 0x214   :  { %v683_v17 = vpop.f32.mrf.mxu1  ;;  %1519 = vmatprep.subr.bf16.mxu0 %v3140_v9  ;;  %v1389_v7 = vpack.c.bf16 %v1374_v6, %v1373_v5  ;;  %v1378_v11 = vld [vmem:[#allocation2 + $0xa8] sm:$0xff]  ;;  %v3163_v6 = vld [vmem:[#allocation7 + $0x50] ss:$8 sps:$4 sm:$0xff]  }
 0x215   :  { %v731_v19 = vmax.f32 %v680_v14, 0.0  ;;  %v752_v23 = vpack.c.bf16 %v730_v16, %v728_v20  ;;  %v684_v27 = vadd.f32 %v683_v17, %v3555_v45  ;;  %v1391_v13 = vpack.c.bf16 %v1378_v11, %v1377_v10  ;;  %v3159_v14 = vld [vmem:[#allocation7 + $0x74] ss:$8 sps:$4 sm:$0xff]  }
 0x216   :  { %v685_v21 = vpop.f32.mrf.mxu1  ;;  %v1380_v16 = vld [vmem:[#allocation2 + $0xb8] sm:$0xff] }
 0x217   :  { %v753_v22 = vpack.c.bf16 %v731_v19, %v729_v18  ;;  %1520 = vmatpush1.bf16.msra.mxu0 %v3138_v15  ;;  %v686_v25 = vadd.f32 %v685_v21, %v3552_v44  ;;  %v732_v34 = vmax.f32 %v684_v27, 0.0  ;;  %v1379_v15 = vld [vmem:[#allocation2 + $0xb0] sm:$0xff]  ;;  %v1381_v18 = vld [vmem:[#allocation2 + $0xc0] sm:$0xff]  ;;  %v1382_v19 = vld [vmem:[#allocation2 + $0xc8] sm:$0xff] }
 0x218   :  { %v687_v24 = vpop.f32.mrf.mxu1  ;;  %v1392_v17 = vpack.c.bf16 %v1380_v16, %v1379_v15  ;;  %v1393_v20 = vpack.c.bf16 %v1382_v19, %v1381_v18  ;;  %v1383_v21 = vld [vmem:[#allocation2 + $0xd0] sm:$0xff] }
 0x219   :  { %v688_v26 = vadd.f32 %v687_v24, %v3555_v45  ;;  %1036 = vmatprep.mubr.bf16.mxu0 %v753_v22  ;;  %v733_v32 = vmax.f32 %v686_v25, 0.0  ;;  %v1384_v22 = vld [vmem:[#allocation2 + $0xd8] sm:$0xff]  ;;  %v1385_v24 = vld [vmem:[#allocation2 + $0xe0] sm:$0xff]  ;;  %v1386_v25 = vld [vmem:[#allocation2 + $0xe8] sm:$0xff] }
 0x21a   :  { %v689_v28 = vpop.f32.mrf.mxu1  ;;  %1037 = vmatmul.mubr.bf16.gmra.mxu0 %v752_v23  ;;  %v1394_v23 = vpack.c.bf16 %v1384_v22, %v1383_v21  ;;  %v1387_v27 = vld [vmem:[#allocation2 + $0xf0] sm:$0xff] }
 0x21b   :  { %v690_v29 = vadd.f32 %v689_v28, %v3552_v44  ;;  %v734_v30 = vmax.f32 %v688_v26, 0.0  ;;  %v1395_v26 = vpack.c.bf16 %v1386_v25, %v1385_v24  ;;  %v1388_v28 = vld [vmem:[#allocation2 + $0xf8] sm:$0xff]  ;;  %v3174_v25 = vld [vmem:[#allocation7 + $0x24] ss:$8 sps:$4 sm:$0xff]  }
 0x21c   :  { %v693_v31 = vpop.f32.mrf.mxu1  ;;  %v3171_v16 = vld [vmem:[#allocation7 + $0x34] ss:$8 sps:$4 sm:$0xff]   ;;  %v3169_v22 = vld [vmem:[#allocation7 + $0x30] ss:$8 sps:$4 sm:$0xff]  }
 0x21d   :  { %v735_v33 = vmax.f32 %v690_v29, 0.0  ;;  %v754_v43 = vpack.c.bf16 %v734_v30, %v732_v34  ;;  %v694_v41 = vadd.f32 %v693_v31, %v3555_v45  ;;  %v1396_v29 = vpack.c.bf16 %v1388_v28, %v1387_v27  ;;  %v792_v30 = vld [vmem:[%s3851_s6] sm:$0x3] }
 0x21e   :  { %v695_v35 = vpop.f32.mrf.mxu1 }
 0x21f   :  { %v755_v36 = vpack.c.bf16 %v735_v33, %v733_v32  ;;  %v696_v42 = vadd.f32 %v695_v35, %v3552_v44  ;;  %v736_v52 = vmax.f32 %v694_v41, 0.0  ;;  %v3601_v32 = vrot.slane %v792_v30, %v3503_v38 }
 0x220   :  { %v697_v37 = vpop.f32.mrf.mxu1  ;;  %v3604_v33 = vrot.slane %v792_v30, %v3505_v39 }
 0x221   :  { %v698_v40 = vadd.f32 %v697_v37, %v3555_v45  ;;  %1046 = vmatprep.mubr.bf16.mxu0 %v755_v36  ;;  %v737_v50 = vmax.f32 %v696_v42, 0.0 }
 0x222   :  { %v699_v46 = vpop.f32.mrf.mxu1  ;;  %1047 = vmatmul.mubr.bf16.gmra.mxu0 %v754_v43 }
 0x223   :  { %v700_v47 = vadd.f32 %v699_v46, %v3552_v44  ;;  %v738_v48 = vmax.f32 %v698_v40, 0.0 }
 0x224   :  { %v703_v49 = vpop.f32.mrf.mxu1 }
 0x225   :  { %v739_v51 = vmax.f32 %v700_v47, 0.0  ;;  %v756_v55 = vpack.c.bf16 %v738_v48, %v736_v52  ;;  %v704_v59 = vadd.f32 %v703_v49, %v3555_v45 }
 0x226   :  { %v705_v53 = vpop.f32.mrf.mxu1 }
 0x227   :  { %v757_v54 = vpack.c.bf16 %v739_v51, %v737_v50  ;;  %v706_v57 = vadd.f32 %v705_v53, %v3552_v44  ;;  %v740_v2 = vmax.f32 %v704_v59, 0.0  ;;  %v3157_v51 = vld [vmem:[#allocation7 + $0x70] ss:$8 sps:$4 sm:$0xff]  }
 0x228   :  { %v707_v56 = vpop.f32.mrf.mxu1 }
 0x229   :  { %v708_v58 = vadd.f32 %v707_v56, %v3555_v45  ;;  %1056 = vmatprep.mubr.bf16.mxu0 %v757_v54  ;;  %v741_v63 = vmax.f32 %v706_v57, 0.0  ;;  %v1375_v45 = vld [vmem:[#allocation2 + $0x90] sm:$0xff]  ;;  %v3162_v54 = vld [vmem:[#allocation7 + $0x64] ss:$8 sps:$4 sm:$0xff]  }
 0x22a   :  { %v709_v60 = vpop.f32.mrf.mxu1  ;;  %1057 = vmatmul.mubr.bf16.gmra.mxu0 %v756_v55  ;;  %v1390_v9 = vpack.c.bf16 %v1376_v8, %v1375_v45  ;;  %v3168_v8 = vld [vmem:[#allocation7 + $0x44] ss:$8 sps:$4 sm:$0xff]  }
 0x22b   :  { %v710_v61 = vadd.f32 %v709_v60, %v3552_v44  ;;  %v742_v62 = vmax.f32 %v708_v58, 0.0  ;;  %v3155_v44 = vld [vmem:[#allocation10 + $0x40] sm:$0xff]  }
 0x22c   :  { %2871 = vmatprep.subr.bf16.mxu1 %v3155_v44  ;;  %v3160_v60 = vld [vmem:[#allocation7 + $0x60] ss:$8 sps:$4 sm:$0xff]  }
 0x22d   :  { %v743_v1 = vmax.f32 %v710_v61, 0.0  ;;  %v758_v4 = vpack.c.bf16 %v742_v62, %v740_v2  ;;  %2872 = vmatpush3.bf16.msra.mxu1 %v3156_v12 }
 0x22e   :  { %1870 = vmatprep.subr.bf16.mxu1 %v3159_v14 }
 0x22f   :  { %v759_v3 = vpack.c.bf16 %v743_v1, %v741_v63  ;;  %v3165_v63 = vld [vmem:[#allocation7 + $0x54] ss:$8 sps:$4 sm:$0xff]  }
 0x231   :  { %1066 = vmatprep.mubr.bf16.mxu0 %v759_v3 }
 0x232   :  { %1067 = vmatmul.mubr.bf16.gmra.mxu0 %v758_v4 }
 0x233   :  { %1537 = vmatprep.mubr.bf16.mxu0 %v3416_v0 }
 0x23a   :  { %1538 = vmatmul.mubr.bf16.vlgmr.msra.gmra.mxu0 %v1389_v7 }
 0x23b   :  { %1547 = vmatprep.mubr.bf16.mxu0 %v3416_v0 }
 0x242   :  { %1548 = vmatmul.mubr.bf16.gmra.mxu0 %v1390_v9 }
 0x243   :  { %1557 = vmatprep.mubr.bf16.mxu0 %v3416_v0 }
 0x24a   :  { %1558 = vmatmul.mubr.bf16.gmra.mxu0 %v1391_v13  ;;  %v3166_v13 = vld [vmem:[#allocation7 + $0x40] ss:$8 sps:$4 sm:$0xff]  }
 0x24b   :  { %1567 = vmatprep.mubr.bf16.mxu0 %v3416_v0 }
 0x252   :  { %1568 = vmatmul.mubr.bf16.gmra.mxu0 %v1392_v17 }
 0x253   :  { %1577 = vmatprep.mubr.bf16.mxu0 %v3416_v0 }
 0x25a   :  { %1578 = vmatmul.mubr.bf16.gmra.mxu0 %v1393_v20 }
 0x25b   :  { %1587 = vmatprep.mubr.bf16.mxu0 %v3416_v0 }
 0x262   :  { %1588 = vmatmul.mubr.bf16.gmra.mxu0 %v1394_v23 }
 0x263   :  { %1597 = vmatprep.mubr.bf16.mxu0 %v3416_v0 }
 0x26a   :  { %1598 = vmatmul.mubr.bf16.gmra.mxu0 %v1395_v26 }
 0x26b   :  { %1607 = vmatprep.mubr.bf16.mxu0 %v3416_v0 }
 0x272   :  { %1608 = vmatmul.mubr.bf16.gmra.mxu0 %v1396_v29 }
 0x2ba   :  { %v998_v31 = vpop.f32.mrf.mxu0 }
 0x2bb   :  { %v999_v43 = vadd.f32 %v998_v31, %v3604_v33  ;;  %v3172_v31 = vld [vmem:[#allocation7 + $0x20] ss:$8 sps:$4 sm:$0xff]  }
 0x2bc   :  { %v1000_v34 = vpop.f32.mrf.mxu0 }
 0x2bd   :  { %v1001_v36 = vadd.f32 %v1000_v34, %v3601_v32  ;;  %v1077_v48 = vmax.f32 %v999_v43, 0.0 }
 0x2be   :  { %v1002_v35 = vpop.f32.mrf.mxu0 }
 0x2bf   :  { %v1003_v0 = vadd.f32 %v1002_v35, %v3604_v33  ;;  %v1078_v46 = vmax.f32 %v1001_v36, 0.0  ;;  %v3177_v36 = vld [vmem:[#allocation7 + $0x14] ss:$8 sps:$4 sm:$0xff]  }
 0x2c0   :  { %v1004_v37 = vpop.f32.mrf.mxu0 }
 0x2c1   :  { %v1005_v42 = vadd.f32 %v1004_v37, %v3601_v32  ;;  %v1079_v40 = vmax.f32 %v1003_v0, 0.0 }
 0x2c2   :  { %v1008_v41 = vpop.f32.mrf.mxu0 }
 0x2c3   :  { %v1080_v47 = vmax.f32 %v1005_v42, 0.0  ;;  %v1109_v52 = vpack.c.bf16 %v1079_v40, %v1077_v48  ;;  %v1009_v57 = vadd.f32 %v1008_v41, %v3604_v33  ;;  %v3175_v41 = vld [vmem:[#allocation7 + $0x10] ss:$8 sps:$4 sm:$0xff]   ;;  %v3180_v48 = vld [vmem:[#allocation7 + $0x4] ss:$8 sps:$4 sm:$0xff]  }
 0x2c4   :  { %v1010_v49 = vpop.f32.mrf.mxu0 }
 0x2c5   :  { %v1110_v50 = vpack.c.bf16 %v1080_v47, %v1078_v46  ;;  %v1011_v55 = vadd.f32 %v1010_v49, %v3601_v32  ;;  %v1081_v3 = vmax.f32 %v1009_v57, 0.0  ;;  %v3183_v57 = vld [vmem:[#allocation7 + $0xf4] ss:$8 sps:$4 sm:$0xff]  }
 0x2c6   :  { %v1012_v53 = vpop.f32.mrf.mxu0 }
 0x2c7   :  { %v1013_v56 = vadd.f32 %v1012_v53, %v3604_v33  ;;  %1292 = vmatprep.mubr.bf16.mxu1 %v1110_v50  ;;  %v1082_v1 = vmax.f32 %v1011_v55, 0.0 }
 0x2c8   :  { %v1014_v58 = vpop.f32.mrf.mxu0  ;;  %1293 = vmatmul.mubr.bf16.vlgmr.msra.gmra.mxu1 %v1109_v52 }
 0x2c9   :  { %v1015_v59 = vadd.f32 %v1014_v58, %v3601_v32  ;;  %1871 = vmatpush1.bf16.msra.mxu1 %v3157_v51  ;;  %v1083_v61 = vmax.f32 %v1013_v56, 0.0 }
 0x2ca   :  { %v1018_v62 = vpop.f32.mrf.mxu0  ;;  %1872 = vmatprep.subr.bf16.mxu1 %v3162_v54  ;;  %v3178_v54 = vld [vmem:[#allocation7] ss:$8 sps:$4 sm:$0xff]  }
 0x2cb   :  { %v1084_v2 = vmax.f32 %v1015_v59, 0.0  ;;  %v1111_v7 = vpack.c.bf16 %v1083_v61, %v1081_v3  ;;  %v1019_v10 = vadd.f32 %v1018_v62, %v3604_v33  ;;  %v3186_v3 = vld [vmem:[#allocation7 + $0xe4] ss:$8 sps:$4 sm:$0xff]  }
 0x2cc   :  { %v1020_v4 = vpop.f32.mrf.mxu0 }
 0x2cd   :  { %v1112_v5 = vpack.c.bf16 %v1084_v2, %v1082_v1  ;;  %1873 = vmatpush1.bf16.msra.mxu1 %v3160_v60  ;;  %v1021_v9 = vadd.f32 %v1020_v4, %v3601_v32  ;;  %v1085_v19 = vmax.f32 %v1019_v10, 0.0  ;;  %v3189_v10 = vld [vmem:[#allocation7 + $0xd4] ss:$8 sps:$4 sm:$0xff]  }
 0x2ce   :  { %v1022_v45 = vpop.f32.mrf.mxu0  ;;  %1874 = vmatprep.subr.bf16.mxu1 %v3165_v63  ;;  %v3181_v63 = vld [vmem:[#allocation7 + $0xf0] ss:$8 sps:$4 sm:$0xff]  }
 0x2cf   :  { %v1023_v44 = vadd.f32 %v1022_v45, %v3604_v33  ;;  %1300 = vmatprep.mubr.bf16.mxu1 %v1112_v5  ;;  %v1086_v17 = vmax.f32 %v1021_v9, 0.0 }
 0x2d0   :  { %v1024_v11 = vpop.f32.mrf.mxu0  ;;  %1301 = vmatmul.mubr.bf16.gmra.mxu1 %v1111_v7 }
 0x2d1   :  { %v1025_v12 = vadd.f32 %v1024_v11, %v3601_v32  ;;  %1875 = vmatpush1.bf16.msra.mxu1 %v3163_v6  ;;  %v1087_v14 = vmax.f32 %v1023_v44, 0.0 }
 0x2d2   :  { %v1028_v15 = vpop.f32.mrf.mxu0  ;;  %1876 = vmatprep.subr.bf16.mxu1 %v3168_v8  ;;  %v3184_v8 = vld [vmem:[#allocation7 + $0xe0] ss:$8 sps:$4 sm:$0xff]  }
 0x2d3   :  { %v1088_v18 = vmax.f32 %v1025_v12, 0.0  ;;  %v1113_v23 = vpack.c.bf16 %v1087_v14, %v1085_v19  ;;  %v1029_v28 = vadd.f32 %v1028_v15, %v3604_v33  ;;  %v3192_v19 = vld [vmem:[#allocation7 + $0xc4] ss:$8 sps:$4 sm:$0xff]  }
 0x2d4   :  { %v1030_v20 = vpop.f32.mrf.mxu0 }
 0x2d5   :  { %v1114_v21 = vpack.c.bf16 %v1088_v18, %v1086_v17  ;;  %1877 = vmatpush1.bf16.msra.mxu1 %v3166_v13  ;;  %v1031_v26 = vadd.f32 %v1030_v20, %v3601_v32  ;;  %v1089_v37 = vmax.f32 %v1029_v28, 0.0  ;;  %v3195_v28 = vld [vmem:[#allocation7 + $0xb4] ss:$8 sps:$4 sm:$0xff]  }
 0x2d6   :  { %v1032_v24 = vpop.f32.mrf.mxu0  ;;  %1878 = vmatprep.subr.bf16.mxu1 %v3171_v16  ;;  %v3187_v16 = vld [vmem:[#allocation7 + $0xd0] ss:$8 sps:$4 sm:$0xff]  }
 0x2d7   :  { %v1033_v27 = vadd.f32 %v1032_v24, %v3604_v33  ;;  %1308 = vmatprep.mubr.bf16.mxu1 %v1114_v21  ;;  %v1090_v0 = vmax.f32 %v1031_v26, 0.0 }
 0x2d8   :  { %v1034_v29 = vpop.f32.mrf.mxu0  ;;  %1309 = vmatmul.mubr.bf16.gmra.mxu1 %v1113_v23 }
 0x2d9   :  { %v1035_v30 = vadd.f32 %v1034_v29, %v3601_v32  ;;  %1879 = vmatpush1.bf16.msra.mxu1 %v3169_v22  ;;  %v1091_v34 = vmax.f32 %v1033_v27, 0.0 }
 0x2da   :  { %v1038_v35 = vpop.f32.mrf.mxu0  ;;  %1880 = vmatprep.subr.bf16.mxu1 %v3174_v25  ;;  %v3190_v25 = vld [vmem:[#allocation7 + $0xc0] ss:$8 sps:$4 sm:$0xff]  }
 0x2db   :  { %v1092_v43 = vmax.f32 %v1035_v30, 0.0  ;;  %v1115_v46 = vpack.c.bf16 %v1091_v34, %v1089_v37  ;;  %v1039_v51 = vadd.f32 %v1038_v35, %v3604_v33  ;;  %v3198_v37 = vld [vmem:[#allocation7 + $0xa4] ss:$8 sps:$4 sm:$0xff]  }
 0x2dc   :  { %v1040_v42 = vpop.f32.mrf.mxu0 }
 0x2dd   :  { %v1116_v40 = vpack.c.bf16 %v1092_v43, %v1090_v0  ;;  %1881 = vmatpush1.bf16.msra.mxu1 %v3172_v31  ;;  %v1041_v49 = vadd.f32 %v1040_v42, %v3601_v32  ;;  %v1093_v60 = vmax.f32 %v1039_v51, 0.0 }
 0x2de   :  { %v1042_v47 = vpop.f32.mrf.mxu0  ;;  %1882 = vmatprep.subr.bf16.mxu1 %v3177_v36  ;;  %v3193_v36 = vld [vmem:[#allocation7 + $0xb0] ss:$8 sps:$4 sm:$0xff]  }
 0x2df   :  { %v1043_v50 = vadd.f32 %v1042_v47, %v3604_v33  ;;  %1316 = vmatprep.mubr.bf16.mxu1 %v1116_v40  ;;  %v1094_v58 = vmax.f32 %v1041_v49, 0.0  ;;  %v3196_v49 = vld [vmem:[#allocation7 + $0xa0] ss:$8 sps:$4 sm:$0xff]  }
 0x2e0   :  { %v1044_v52 = vpop.f32.mrf.mxu0  ;;  %1317 = vmatmul.mubr.bf16.gmra.mxu1 %v1115_v46 }
 0x2e1   :  { %v1045_v53 = vadd.f32 %v1044_v52, %v3601_v32  ;;  %1883 = vmatpush1.bf16.msra.mxu1 %v3175_v41  ;;  %v1095_v55 = vmax.f32 %v1043_v50, 0.0  ;;  %v3201_v52 = vld [vmem:[#allocation7 + $0x94] ss:$8 sps:$4 sm:$0xff]  }
 0x2e2   :  { %v1048_v56 = vpop.f32.mrf.mxu0  ;;  %1884 = vmatprep.subr.bf16.mxu1 %v3180_v48  ;;  %v1413_v48 = vld [vmem:[%s3847_s2] sm:$0x3] }
 0x2e3   :  { %v1096_v59 = vmax.f32 %v1045_v53, 0.0  ;;  %v1117_v1 = vpack.c.bf16 %v1095_v55, %v1093_v60  ;;  %v1049_v6 = vadd.f32 %v1048_v56, %v3604_v33  ;;  %v3642_v55 = vrot.slane %v1413_v48, %v3503_v38 }
 0x2e4   :  { %v1050_v61 = vpop.f32.mrf.mxu0  ;;  %v3645_v56 = vrot.slane %v1413_v48, %v3505_v39 }
 0x2e5   :  { %v1118_v62 = vpack.c.bf16 %v1096_v59, %v1094_v58  ;;  %1885 = vmatpush1.bf16.msra.mxu1 %v3178_v54  ;;  %v1051_v4 = vadd.f32 %v1050_v61, %v3601_v32  ;;  %v1097_v13 = vmax.f32 %v1049_v6, 0.0  ;;  %v3199_v58 = vld [vmem:[#allocation7 + $0x90] ss:$8 sps:$4 sm:$0xff]   ;;  %v3204_v61 = vld [vmem:[#allocation7 + $0x84] ss:$8 sps:$4 sm:$0xff]  }
 0x2e6   :  { %v1052_v2 = vpop.f32.mrf.mxu0  ;;  %1886 = vmatprep.subr.bf16.mxu1 %v3183_v57 }
 0x2e7   :  { %v1053_v5 = vadd.f32 %v1052_v2, %v3604_v33  ;;  %1324 = vmatprep.mubr.bf16.mxu1 %v1118_v62  ;;  %v1098_v11 = vmax.f32 %v1051_v4, 0.0  ;;  %v3202_v4 = vld [vmem:[#allocation7 + $0x80] ss:$8 sps:$4 sm:$0xff]  }
 0x2e8   :  { %v1054_v7 = vpop.f32.mrf.mxu0  ;;  %1325 = vmatmul.mubr.bf16.gmra.mxu1 %v1117_v1 }
 0x2e9   :  { %v1055_v45 = vadd.f32 %v1054_v7, %v3601_v32  ;;  %1887 = vmatpush2.bf16.msra.mxu1 %v3181_v63  ;;  %v1099_v9 = vmax.f32 %v1053_v5, 0.0 }
 0x2ea   :  { %v1058_v44 = vpop.f32.mrf.mxu0  ;;  %1888 = vmatprep.subr.bf16.mxu1 %v3186_v3 }
 0x2eb   :  { %v1100_v12 = vmax.f32 %v1055_v45, 0.0  ;;  %v1119_v17 = vpack.c.bf16 %v1099_v9, %v1097_v13  ;;  %v1059_v22 = vadd.f32 %v1058_v44, %v3604_v33 }
 0x2ec   :  { %v1060_v14 = vpop.f32.mrf.mxu0 }
 0x2ed   :  { %v1120_v15 = vpack.c.bf16 %v1100_v12, %v1098_v11  ;;  %1889 = vmatpush2.bf16.msra.mxu1 %v3184_v8  ;;  %v1061_v20 = vadd.f32 %v1060_v14, %v3601_v32  ;;  %v1101_v31 = vmax.f32 %v1059_v22, 0.0 }
 0x2ee   :  { %v1062_v18 = vpop.f32.mrf.mxu0  ;;  %1890 = vmatprep.subr.bf16.mxu1 %v3189_v10 }
 0x2ef   :  { %v1063_v21 = vadd.f32 %v1062_v18, %v3604_v33  ;;  %1332 = vmatprep.mubr.bf16.mxu1 %v1120_v15  ;;  %v1102_v29 = vmax.f32 %v1061_v20, 0.0 }
 0x2f0   :  { %v1064_v23 = vpop.f32.mrf.mxu0  ;;  %1333 = vmatmul.mubr.bf16.gmra.mxu1 %v1119_v17 }
 0x2f1   :  { %v1065_v24 = vadd.f32 %v1064_v23, %v3601_v32  ;;  %1891 = vmatpush2.bf16.msra.mxu1 %v3187_v16  ;;  %v1103_v26 = vmax.f32 %v1063_v21, 0.0 }
 0x2f2   :  { %v1068_v27 = vpop.f32.mrf.mxu0  ;;  %1892 = vmatprep.subr.bf16.mxu1 %v3192_v19 }
 0x2f3   :  { %v1104_v30 = vmax.f32 %v1065_v24, 0.0  ;;  %v1121_v0 = vpack.c.bf16 %v1103_v26, %v1101_v31  ;;  %v1069_v41 = vadd.f32 %v1068_v27, %v3604_v33 }
 0x2f4   :  { %v1070_v34 = vpop.f32.mrf.mxu0 }
 0x2f5   :  { %v1122_v35 = vpack.c.bf16 %v1104_v30, %v1102_v29  ;;  %1893 = vmatpush2.bf16.msra.mxu1 %v3190_v25  ;;  %v1071_v42 = vadd.f32 %v1070_v34, %v3601_v32 }
 0x2f6   :  { %v1072_v43 = vpop.f32.mrf.mxu0  ;;  %1894 = vmatprep.subr.bf16.mxu1 %v3195_v28 }
 0x2f7   :  { %v1073_v40 = vadd.f32 %v1072_v43, %v3604_v33  ;;  %1340 = vmatprep.mubr.bf16.mxu1 %v1122_v35  ;;  %v1106_v53 = vmax.f32 %v1071_v42, 0.0  ;;  %v1105_v33 = vmax.f32 %v1069_v41, 0.0 }
 0x2f8   :  { %v1074_v46 = vpop.f32.mrf.mxu0  ;;  %1341 = vmatmul.mubr.bf16.gmra.mxu1 %v1121_v0 }
 0x2f9   :  { %v1075_v47 = vadd.f32 %v1074_v46, %v3601_v32  ;;  %1895 = vmatpush2.bf16.msra.mxu1 %v3193_v36  ;;  %v1107_v50 = vmax.f32 %v1073_v40, 0.0  ;;  %v3205_v40 = vld [vmem:[#allocation8 + $0x70] ss:$8 sps:$4 sm:$0xff]  }
 0x2fa   :  { %v1539_v51 = vpop.f32.mrf.mxu0  ;;  %1896 = vmatprep.subr.bf16.mxu1 %v3198_v37  ;;  %v3207_v37 = vld [vmem:[#allocation8 + $0x74] ss:$8 sps:$4 sm:$0xff]  }
 0x2fb   :  { %v1108_v54 = vmax.f32 %v1075_v47, 0.0  ;;  %v1123_v59 = vpack.c.bf16 %v1107_v50, %v1105_v33  ;;  %v1540_v1 = vadd.f32 %v1539_v51, %v3645_v56  ;;  %2235 = vmatprep.subr.bf16.mxu0 %v3207_v37  ;;  %v3210_v51 = vld [vmem:[#allocation8 + $0x64] ss:$8 sps:$4 sm:$0xff]  }
 0x2fc   :  { %v1541_v32 = vpop.f32.mrf.mxu0  ;;  %2236 = vmatpush1.bf16.msra.mxu0 %v3205_v40 }
 0x2fd   :  { %v1124_v57 = vpack.c.bf16 %v1108_v54, %v1106_v53  ;;  %1897 = vmatpush2.bf16.msra.mxu1 %v3196_v49  ;;  %v1542_v62 = vadd.f32 %v1541_v32, %v3642_v55  ;;  %v1618_v8 = vmax.f32 %v1540_v1, 0.0  ;;  %v3208_v53 = vld [vmem:[#allocation8 + $0x60] ss:$8 sps:$4 sm:$0xff]   ;;  %2237 = vmatprep.subr.bf16.mxu0 %v3210_v51 }
 0x2fe   :  { %v1543_v60 = vpop.f32.mrf.mxu0  ;;  %1898 = vmatprep.subr.bf16.mxu1 %v3201_v52 }
 0x2ff   :  { %v1544_v63 = vadd.f32 %v1543_v60, %v3645_v56  ;;  %1348 = vmatprep.mubr.bf16.mxu1 %v1124_v57  ;;  %v1619_v7 = vmax.f32 %v1542_v62, 0.0  ;;  %v3213_v60 = vld [vmem:[#allocation8 + $0x54] ss:$8 sps:$4 sm:$0xff]   ;;  %v3211_v62 = vld [vmem:[#allocation8 + $0x50] ss:$8 sps:$4 sm:$0xff]  }
 0x300   :  { %1349 = vmatmul.mubr.bf16.gmra.mxu1 %v1123_v59  ;;  %v1545_v2 = vpop.f32.mrf.mxu0  ;;  %2238 = vmatpush1.bf16.msra.mxu0 %v3208_v53 }
 0x301   :  { %v1546_v3 = vadd.f32 %v1545_v2, %v3642_v55  ;;  %1899 = vmatpush2.bf16.msra.mxu1 %v3199_v58  ;;  %v1620_v5 = vmax.f32 %v1544_v63, 0.0  ;;  %2239 = vmatprep.subr.bf16.mxu0 %v3213_v60 }
 0x302   :  { %v1549_v6 = vpop.f32.mrf.mxu0  ;;  %1900 = vmatprep.subr.bf16.mxu1 %v3204_v61 }
 0x303   :  { %v1621_v45 = vmax.f32 %v1546_v3, 0.0  ;;  %v1650_v10 = vpack.c.bf16 %v1620_v5, %v1618_v8  ;;  %v1550_v14 = vadd.f32 %v1549_v6, %v3645_v56  ;;  %v3216_v6 = vld [vmem:[#allocation8 + $0x44] ss:$8 sps:$4 sm:$0xff]  }
 0x304   :  { %v1551_v9 = vpop.f32.mrf.mxu0  ;;  %2240 = vmatpush1.bf16.msra.mxu0 %v3211_v62 }
 0x305   :  { %v1651_v44 = vpack.c.bf16 %v1621_v45, %v1619_v7  ;;  %1901 = vmatpush2.bf16.msra.mxu1 %v3202_v4  ;;  %v1552_v12 = vadd.f32 %v1551_v9, %v3642_v55  ;;  %v1622_v21 = vmax.f32 %v1550_v14, 0.0  ;;  %v3214_v45 = vld [vmem:[#allocation8 + $0x40] ss:$8 sps:$4 sm:$0xff]   ;;  %2241 = vmatprep.subr.bf16.mxu0 %v3216_v6 }
 0x306   :  { %v1553_v11 = vpop.f32.mrf.mxu0 }
 0x307   :  { %v1554_v13 = vadd.f32 %v1553_v11, %v3645_v56  ;;  %1902 = vmatprep.mubr.bf16.mxu1 %v1651_v44  ;;  %v1623_v19 = vmax.f32 %v1552_v12, 0.0 }
 0x308   :  { %v1555_v15 = vpop.f32.mrf.mxu0  ;;  %1903 = vmatmul.mubr.bf16.vlgmr.msra.gmra.mxu1 %v1650_v10  ;;  %2242 = vmatpush1.bf16.msra.mxu0 %v3214_v45 }
 0x309   :  { %v1556_v16 = vadd.f32 %v1555_v15, %v3642_v55  ;;  %v1624_v17 = vmax.f32 %v1554_v13, 0.0  ;;  %v3219_v13 = vld [vmem:[#allocation8 + $0x34] ss:$8 sps:$4 sm:$0xff]   ;;  %v3217_v15 = vld [vmem:[#allocation8 + $0x30] ss:$8 sps:$4 sm:$0xff]  }
 0x30a   :  { %v1559_v18 = vpop.f32.mrf.mxu0  ;;  %2243 = vmatprep.subr.bf16.mxu0 %v3219_v13  ;;  %v3249_v13 = vld [vmem:[#allocation8 + $0x94] ss:$8 sps:$4 sm:$0xff]  }
 0x30b   :  { %v1625_v20 = vmax.f32 %v1556_v16, 0.0  ;;  %v1652_v24 = vpack.c.bf16 %v1624_v17, %v1622_v21  ;;  %v1560_v28 = vadd.f32 %v1559_v18, %v3645_v56 }
 0x30c   :  { %v1561_v22 = vpop.f32.mrf.mxu0  ;;  %2244 = vmatpush1.bf16.msra.mxu0 %v3217_v15  ;;  %v3252_v15 = vld [vmem:[#allocation8 + $0x84] ss:$8 sps:$4 sm:$0xff]  }
 0x30d   :  { %v1653_v23 = vpack.c.bf16 %v1625_v20, %v1623_v19  ;;  %v1562_v26 = vadd.f32 %v1561_v22, %v3642_v55  ;;  %v1626_v0 = vmax.f32 %v1560_v28, 0.0  ;;  %v3222_v22 = vld [vmem:[#allocation8 + $0x24] ss:$8 sps:$4 sm:$0xff]  }
 0x30e   :  { %v1563_v25 = vpop.f32.mrf.mxu0  ;;  %2245 = vmatprep.subr.bf16.mxu0 %v3222_v22 }
 0x30f   :  { %v1564_v27 = vadd.f32 %v1563_v25, %v3645_v56  ;;  %1912 = vmatprep.mubr.bf16.mxu1 %v1653_v23  ;;  %v1627_v35 = vmax.f32 %v1562_v26, 0.0 }
 0x310   :  { %v1565_v29 = vpop.f32.mrf.mxu0  ;;  %1913 = vmatmul.mubr.bf16.gmra.mxu1 %v1652_v24  ;;  %v3220_v24 = vld [vmem:[#allocation8 + $0x20] ss:$8 sps:$4 sm:$0xff]  }
 0x311   :  { %v1566_v30 = vadd.f32 %v1565_v29, %v3642_v55  ;;  %v1628_v31 = vmax.f32 %v1564_v27, 0.0  ;;  %2246 = vmatpush1.bf16.msra.mxu0 %v3220_v24  ;;  %v3253_v24 = vld [vmem:[#allocation10 + $0x78] sm:$0xff]  }
 0x312   :  { %v1569_v34 = vpop.f32.mrf.mxu0  ;;  %2985 = vmatprep.subr.bf16.mxu1 %v3253_v24 }
 0x313   :  { %v1629_v36 = vmax.f32 %v1566_v30, 0.0  ;;  %v1654_v41 = vpack.c.bf16 %v1628_v31, %v1626_v0  ;;  %v1570_v49 = vadd.f32 %v1569_v34, %v3645_v56  ;;  %v3225_v31 = vld [vmem:[#allocation8 + $0x14] ss:$8 sps:$4 sm:$0xff]  }
 0x314   :  { %v1571_v43 = vpop.f32.mrf.mxu0  ;;  %2247 = vmatprep.subr.bf16.mxu0 %v3225_v31 }
 0x315   :  { %v1655_v42 = vpack.c.bf16 %v1629_v36, %v1627_v35  ;;  %v1572_v47 = vadd.f32 %v1571_v43, %v3642_v55  ;;  %v1630_v58 = vmax.f32 %v1570_v49, 0.0  ;;  %v3223_v35 = vld [vmem:[#allocation8 + $0x10] ss:$8 sps:$4 sm:$0xff]  }
 0x316   :  { %v1573_v46 = vpop.f32.mrf.mxu0  ;;  %2248 = vmatpush1.bf16.msra.mxu0 %v3223_v35 }
 0x317   :  { %v1574_v48 = vadd.f32 %v1573_v46, %v3645_v56  ;;  %1922 = vmatprep.mubr.bf16.mxu1 %v1655_v42  ;;  %v1631_v32 = vmax.f32 %v1572_v47, 0.0  ;;  %v3226_v47 = vld [vmem:[#allocation8] ss:$8 sps:$4 sm:$0xff]  }
 0x318   :  { %v1575_v50 = vpop.f32.mrf.mxu0  ;;  %1923 = vmatmul.mubr.bf16.gmra.mxu1 %v1654_v41  ;;  %v3228_v41 = vld [vmem:[#allocation8 + $0x4] ss:$8 sps:$4 sm:$0xff]  }
 0x319   :  { %v1576_v52 = vadd.f32 %v1575_v50, %v3642_v55  ;;  %v1632_v54 = vmax.f32 %v1574_v48, 0.0  ;;  %2249 = vmatprep.subr.bf16.mxu0 %v3228_v41  ;;  %v3701_v41 = vld [vmem:[#allocation10 + $0x60] sm:$0xff]  }
 0x31a   :  { %v1579_v33 = vpop.f32.mrf.mxu0  ;;  %2250 = vmatpush1.bf16.msra.mxu0 %v3226_v47 }
 0x31b   :  { %v1633_v57 = vmax.f32 %v1576_v52, 0.0  ;;  %v1656_v63 = vpack.c.bf16 %v1632_v54, %v1630_v58  ;;  %v1580_v4 = vadd.f32 %v1579_v33, %v3645_v56  ;;  %v3231_v54 = vld [vmem:[#allocation8 + $0xf4] ss:$8 sps:$4 sm:$0xff]  }
 0x31c   :  { %v1581_v59 = vpop.f32.mrf.mxu0  ;;  %2251 = vmatprep.subr.bf16.mxu0 %v3231_v54 }
 0x31d   :  { %v1657_v61 = vpack.c.bf16 %v1633_v57, %v1631_v32  ;;  %v1582_v2 = vadd.f32 %v1581_v59, %v3642_v55  ;;  %v1634_v11 = vmax.f32 %v1580_v4, 0.0  ;;  %v3229_v32 = vld [vmem:[#allocation8 + $0xf0] ss:$8 sps:$4 sm:$0xff]  }
 0x31e   :  { %v1583_v1 = vpop.f32.mrf.mxu0  ;;  %2252 = vmatpush2.bf16.msra.mxu0 %v3229_v32 }
 0x31f   :  { %v1584_v3 = vadd.f32 %v1583_v1, %v3645_v56  ;;  %1932 = vmatprep.mubr.bf16.mxu1 %v1657_v61  ;;  %v1635_v44 = vmax.f32 %v1582_v2, 0.0  ;;  %v3232_v2 = vld [vmem:[#allocation8 + $0xe0] ss:$8 sps:$4 sm:$0xff]  }
 0x320   :  { %v1585_v5 = vpop.f32.mrf.mxu0  ;;  %1933 = vmatmul.mubr.bf16.gmra.mxu1 %v1656_v63  ;;  %v3234_v63 = vld [vmem:[#allocation8 + $0xe4] ss:$8 sps:$4 sm:$0xff]  }
 0x321   :  { %v1586_v7 = vadd.f32 %v1585_v5, %v3642_v55  ;;  %v1636_v8 = vmax.f32 %v1584_v3, 0.0  ;;  %2253 = vmatprep.subr.bf16.mxu0 %v3234_v63 }
 0x322   :  { %v1589_v9 = vpop.f32.mrf.mxu0  ;;  %2254 = vmatpush2.bf16.msra.mxu0 %v3232_v2 }
 0x323   :  { %v1637_v10 = vmax.f32 %v1586_v7, 0.0  ;;  %v1658_v16 = vpack.c.bf16 %v1636_v8, %v1634_v11  ;;  %v1590_v20 = vadd.f32 %v1589_v9, %v3645_v56  ;;  %v3237_v7 = vld [vmem:[#allocation8 + $0xd4] ss:$8 sps:$4 sm:$0xff]   ;;  %v3235_v8 = vld [vmem:[#allocation8 + $0xd0] ss:$8 sps:$4 sm:$0xff]  }
 0x324   :  { %v1591_v12 = vpop.f32.mrf.mxu0  ;;  %2255 = vmatprep.subr.bf16.mxu0 %v3237_v7  ;;  %v3246_v11 = vld [vmem:[#allocation8 + $0xa4] ss:$8 sps:$4 sm:$0xff]  }
 0x325   :  { %v1659_v14 = vpack.c.bf16 %v1637_v10, %v1635_v44  ;;  %v1592_v18 = vadd.f32 %v1591_v12, %v3642_v55  ;;  %v1638_v29 = vmax.f32 %v1590_v20, 0.0  ;;  %v3238_v44 = vld [vmem:[#allocation8 + $0xc0] ss:$8 sps:$4 sm:$0xff]   ;;  %v3241_v10 = vld [vmem:[#allocation8 + $0xb0] ss:$8 sps:$4 sm:$0xff]  }
 0x326   :  { %v1593_v17 = vpop.f32.mrf.mxu0  ;;  %2256 = vmatpush2.bf16.msra.mxu0 %v3235_v8  ;;  %v3244_v12 = vld [vmem:[#allocation8 + $0xa0] ss:$8 sps:$4 sm:$0xff]  }
 0x327   :  { %v1594_v19 = vadd.f32 %v1593_v17, %v3645_v56  ;;  %1942 = vmatprep.mubr.bf16.mxu1 %v1659_v14  ;;  %v1639_v27 = vmax.f32 %v1592_v18, 0.0  ;;  %v3247_v14 = vld [vmem:[#allocation8 + $0x90] ss:$8 sps:$4 sm:$0xff]   ;;  %v3682_v18 = vld [vmem:[%s3853_s8] ss:$0 sm:$0xff] }
 0x328   :  { %v1595_v21 = vpop.f32.mrf.mxu0  ;;  %1943 = vmatmul.mubr.bf16.gmra.mxu1 %v1658_v16  ;;  %v3250_v16 = vld [vmem:[#allocation8 + $0x80] ss:$8 sps:$4 sm:$0xff]  }
 0x329   :  { %v1596_v23 = vadd.f32 %v1595_v21, %v3642_v55  ;;  %v1640_v25 = vmax.f32 %v1594_v19, 0.0 }
 0x32a   :  { %v1599_v26 = vpop.f32.mrf.mxu0 }
 0x32b   :  { %v1641_v28 = vmax.f32 %v1596_v23, 0.0  ;;  %v1660_v36 = vpack.c.bf16 %v1640_v25, %v1638_v29  ;;  %v1600_v42 = vadd.f32 %v1599_v26, %v3645_v56  ;;  %v3685_v26 = vld [vmem:[#allocation10 + $0x38] sm:$0xff]  }
 0x32c   :  { %v1601_v30 = vpop.f32.mrf.mxu0  ;;  %2993 = vmatpush3.bf16.msra.mxu1 %v3685_v26 }
 0x32d   :  { %v1661_v34 = vpack.c.bf16 %v1641_v28, %v1639_v27  ;;  %v1602_v43 = vadd.f32 %v1601_v30, %v3642_v55  ;;  %v1642_v52 = vmax.f32 %v1600_v42, 0.0  ;;  %v3687_v28 = vld [vmem:[#allocation10 + $0x70] sm:$0xff]   ;;  %v3699_v42 = vld [vmem:[#allocation10 + $0x28] sm:$0xff]  }
 0x32e   :  { %v1603_v0 = vpop.f32.mrf.mxu0  ;;  %2986 = vmatprep.subr.bf16.mxu1 %v3687_v28 }
 0x32f   :  { %v1604_v37 = vadd.f32 %v1603_v0, %v3645_v56  ;;  %1952 = vmatprep.mubr.bf16.mxu1 %v1661_v34  ;;  %v1643_v50 = vmax.f32 %v1602_v43, 0.0  ;;  %v3692_v34 = vld [vmem:[#allocation10 + $0x30] sm:$0xff]  }
 0x330   :  { %v1605_v40 = vpop.f32.mrf.mxu0  ;;  %1953 = vmatmul.mubr.bf16.gmra.mxu1 %v1660_v36  ;;  %v3694_v36 = vld [vmem:[#allocation10 + $0x68] sm:$0xff]  }
 0x331   :  { %v1606_v46 = vadd.f32 %v1605_v40, %v3642_v55  ;;  %v1644_v48 = vmax.f32 %v1604_v37, 0.0  ;;  %2994 = vmatpush3.bf16.msra.mxu1 %v3692_v34 }
 0x332   :  { %v1609_v49 = vpop.f32.mrf.mxu0  ;;  %2987 = vmatprep.subr.bf16.mxu1 %v3694_v36 }
 0x333   :  { %v1645_v51 = vmax.f32 %v1606_v46, 0.0  ;;  %v1662_v57 = vpack.c.bf16 %v1644_v48, %v1642_v52  ;;  %v1610_v61 = vadd.f32 %v1609_v49, %v3645_v56  ;;  %v3706_v49 = vld [vmem:[#allocation10 + $0x20] sm:$0xff]  }
 0x334   :  { %v1611_v53 = vpop.f32.mrf.mxu0 }
 0x335   :  { %v1663_v33 = vpack.c.bf16 %v1645_v51, %v1643_v50  ;;  %v1612_v59 = vadd.f32 %v1611_v53, %v3642_v55  ;;  %v1646_v6 = vmax.f32 %v1610_v61, 0.0  ;;  %2995 = vmatpush3.bf16.msra.mxu1 %v3699_v42  ;;  %v3708_v51 = vld [vmem:[#allocation10 + $0x58] sm:$0xff]  }
 0x336   :  { %v1613_v58 = vpop.f32.mrf.mxu0  ;;  %2988 = vmatprep.subr.bf16.mxu1 %v3701_v41 }
 0x337   :  { %v1614_v60 = vadd.f32 %v1613_v58, %v3645_v56  ;;  %1962 = vmatprep.mubr.bf16.mxu1 %v1663_v33  ;;  %v1647_v4 = vmax.f32 %v1612_v59, 0.0  ;;  %v3240_v56 = vld [vmem:[#allocation8 + $0xc4] ss:$8 sps:$4 sm:$0xff]   ;;  %v3713_v33 = vld [vmem:[#allocation10 + $0x18] sm:$0xff]  }
 0x338   :  { %v1615_v62 = vpop.f32.mrf.mxu0  ;;  %1963 = vmatmul.mubr.bf16.gmra.mxu1 %v1662_v57  ;;  %2257 = vmatprep.subr.bf16.mxu0 %v3240_v56 }
 0x339   :  { %v1616_v1 = vadd.f32 %v1615_v62, %v3642_v55  ;;  %v1648_v3 = vmax.f32 %v1614_v60, 0.0  ;;  %2258 = vmatpush2.bf16.msra.mxu0 %v3238_v44  ;;  %v3243_v55 = vld [vmem:[#allocation8 + $0xb4] ss:$8 sps:$4 sm:$0xff]   ;;  %2996 = vmatpush3.bf16.msra.mxu1 %v3706_v49 }
 0x33a   :  { %2259 = vmatprep.subr.bf16.mxu0 %v3243_v55  ;;  %2989 = vmatprep.subr.bf16.mxu1 %v3708_v51 }
 0x33b   :  { %v1649_v5 = vmax.f32 %v1616_v1, 0.0  ;;  %v1664_v9 = vpack.c.bf16 %v1648_v3, %v1646_v6 }
 0x33d   :  { %v1665_v45 = vpack.c.bf16 %v1649_v5, %v1647_v4  ;;  %2260 = vmatpush2.bf16.msra.mxu0 %v3241_v10  ;;  %2997 = vmatpush3.bf16.msra.mxu1 %v3713_v33 }
 0x33e   :  { %2261 = vmatprep.subr.bf16.mxu0 %v3246_v11 }
 0x33f   :  { %1972 = vmatprep.mubr.bf16.mxu1 %v1665_v45 }
 0x340   :  { %1973 = vmatmul.mubr.bf16.gmra.mxu1 %v1664_v9 }
 0x341   :  { %2262 = vmatpush2.bf16.msra.mxu0 %v3244_v12 }
 0x342   :  { %2263 = vmatprep.subr.bf16.mxu0 %v3249_v13 }
 0x345   :  { %2264 = vmatpush2.bf16.msra.mxu0 %v3247_v14 }
 0x346   :  { %2265 = vmatprep.subr.bf16.mxu0 %v3252_v15 }
 0x349   :  { %2266 = vmatpush2.bf16.msra.mxu0 %v3250_v16 }
 0x34a   :  { %2921 = vmatprep.subr.bf16.mxu0 %v3253_v24 }
 0x388   :  { %v2873_v17 = vpop.f32.mrf.mxu1 }
 0x38a   :  { %v2874_v19 = vpop.f32.mrf.mxu1 }
 0x38b   :  { %v2875_v20 = vadd.f32 %v2874_v19, %v2873_v17 }
 0x38c   :  { %v2876_v21 = vpop.f32.mrf.mxu1 }
 0x38d   :  { %v1295_v22 = vadd.f32 %v2875_v20, %v3682_v18 }
 0x38e   :  { %v2877_v23 = vpop.f32.mrf.mxu1 }
 0x38f   :  { %1357 = vst [vmem:[#allocation11] sm:$0xff] %v1295_v22  ;;  %v2878_v25 = vadd.f32 %v2877_v23, %v2876_v21 }
 0x390   :  { %v2879_v27 = vpop.f32.mrf.mxu1 }
 0x391   :  { %v1298_v29 = vadd.f32 %v2878_v25, %v3682_v18 }
 0x392   :  { %v2880_v30 = vpop.f32.mrf.mxu1 }
 0x393   :  { %1358 = vst [vmem:[#allocation11 + $0x8] sm:$0xff] %v1298_v29  ;;  %v2881_v31 = vadd.f32 %v2880_v30, %v2879_v27 }
 0x394   :  { %v2882_v35 = vpop.f32.mrf.mxu1 }
 0x395   :  { %v1303_v0 = vadd.f32 %v2881_v31, %v3682_v18 }
 0x396   :  { %v2883_v43 = vpop.f32.mrf.mxu1 }
 0x397   :  { %1359 = vst [vmem:[#allocation11 + $0x10] sm:$0xff] %v1303_v0  ;;  %v2884_v37 = vadd.f32 %v2883_v43, %v2882_v35  ;;  %v1698_v35 = vld [vmem:[%s3849_s4] sm:$0x3] }
 0x398   :  { %v2885_v40 = vpop.f32.mrf.mxu1 }
 0x399   :  { %v1306_v46 = vadd.f32 %v2884_v37, %v3682_v18  ;;  %v3731_v37 = vrot.slane %v1698_v35, %v3503_v38 }
 0x39a   :  { %v2886_v47 = vpop.f32.mrf.mxu1 }
 0x39b   :  { %1360 = vst [vmem:[#allocation11 + $0x18] sm:$0xff] %v1306_v46  ;;  %v2887_v48 = vadd.f32 %v2886_v47, %v2885_v40  ;;  %v3734_v40 = vrot.slane %v1698_v35, %v3505_v39 }
 0x39c   :  { %v2888_v50 = vpop.f32.mrf.mxu1 }
 0x39d   :  { %v1311_v52 = vadd.f32 %v2887_v48, %v3682_v18 }
 0x39e   :  { %v2889_v53 = vpop.f32.mrf.mxu1 }
 0x39f   :  { %1361 = vst [vmem:[#allocation11 + $0x20] sm:$0xff] %v1311_v52  ;;  %v2890_v54 = vadd.f32 %v2889_v53, %v2888_v50 }
 0x3a0   :  { %v2891_v32 = vpop.f32.mrf.mxu1 }
 0x3a1   :  { %v1314_v57 = vadd.f32 %v2890_v54, %v3682_v18 }
 0x3a2   :  { %v2892_v58 = vpop.f32.mrf.mxu1 }
 0x3a3   :  { %1362 = vst [vmem:[#allocation11 + $0x28] sm:$0xff] %v1314_v57  ;;  %v2893_v59 = vadd.f32 %v2892_v58, %v2891_v32 }
 0x3a4   :  { %v2894_v60 = vpop.f32.mrf.mxu1 }
 0x3a5   :  { %v1319_v61 = vadd.f32 %v2893_v59, %v3682_v18 }
 0x3a6   :  { %v2895_v62 = vpop.f32.mrf.mxu1 }
 0x3a7   :  { %1363 = vst [vmem:[#allocation11 + $0x30] sm:$0xff] %v1319_v61  ;;  %v2896_v63 = vadd.f32 %v2895_v62, %v2894_v60 }
 0x3a8   :  { %v2897_v1 = vpop.f32.mrf.mxu1 }
 0x3a9   :  { %v1322_v2 = vadd.f32 %v2896_v63, %v3682_v18 }
 0x3aa   :  { %v2898_v3 = vpop.f32.mrf.mxu1 }
 0x3ab   :  { %1364 = vst [vmem:[#allocation11 + $0x38] sm:$0xff] %v1322_v2  ;;  %v2899_v4 = vadd.f32 %v2898_v3, %v2897_v1 }
 0x3ac   :  { %v2900_v5 = vpop.f32.mrf.mxu1 }
 0x3ad   :  { %v1327_v6 = vadd.f32 %v2899_v4, %v3682_v18 }
 0x3ae   :  { %v2901_v7 = vpop.f32.mrf.mxu1 }
 0x3af   :  { %1365 = vst [vmem:[#allocation11 + $0x40] sm:$0xff] %v1327_v6  ;;  %v2902_v45 = vadd.f32 %v2901_v7, %v2900_v5 }
 0x3b0   :  { %v2903_v8 = vpop.f32.mrf.mxu1 }
 0x3b1   :  { %v1330_v9 = vadd.f32 %v2902_v45, %v3682_v18 }
 0x3b2   :  { %v2904_v56 = vpop.f32.mrf.mxu1 }
 0x3b3   :  { %1366 = vst [vmem:[#allocation11 + $0x48] sm:$0xff] %v1330_v9  ;;  %v2905_v44 = vadd.f32 %v2904_v56, %v2903_v8 }
 0x3b4   :  { %v2906_v55 = vpop.f32.mrf.mxu1 }
 0x3b5   :  { %v1335_v10 = vadd.f32 %v2905_v44, %v3682_v18 }
 0x3b6   :  { %v2907_v11 = vpop.f32.mrf.mxu1 }
 0x3b7   :  { %1367 = vst [vmem:[#allocation11 + $0x50] sm:$0xff] %v1335_v10  ;;  %v2908_v12 = vadd.f32 %v2907_v11, %v2906_v55 }
 0x3b8   :  { %v2909_v13 = vpop.f32.mrf.mxu1 }
 0x3b9   :  { %v1338_v14 = vadd.f32 %v2908_v12, %v3682_v18 }
 0x3ba   :  { %v2910_v15 = vpop.f32.mrf.mxu1 }
 0x3bb   :  { %1368 = vst [vmem:[#allocation11 + $0x58] sm:$0xff] %v1338_v14  ;;  %v2911_v16 = vadd.f32 %v2910_v15, %v2909_v13 }
 0x3bc   :  { %v2912_v17 = vpop.f32.mrf.mxu1 }
 0x3bd   :  { %v1343_v19 = vadd.f32 %v2911_v16, %v3682_v18 }
 0x3be   :  { %v2913_v20 = vpop.f32.mrf.mxu1 }
 0x3bf   :  { %1369 = vst [vmem:[#allocation11 + $0x60] sm:$0xff] %v1343_v19  ;;  %v2914_v21 = vadd.f32 %v2913_v20, %v2912_v17 }
 0x3c0   :  { %v2915_v22 = vpop.f32.mrf.mxu1 }
 0x3c1   :  { %v1346_v23 = vadd.f32 %v2914_v21, %v3682_v18 }
 0x3c2   :  { %v2916_v24 = vpop.f32.mrf.mxu1 }
 0x3c3   :  { %1370 = vst [vmem:[#allocation11 + $0x68] sm:$0xff] %v1346_v23  ;;  %v2917_v25 = vadd.f32 %v2916_v24, %v2915_v22 }
 0x3c4   :  { %v2918_v27 = vpop.f32.mrf.mxu1 }
 0x3c5   :  { %v1351_v29 = vadd.f32 %v2917_v25, %v3682_v18 }
 0x3c6   :  { %v2919_v30 = vpop.f32.mrf.mxu1 }
 0x3c7   :  { %1371 = vst [vmem:[#allocation11 + $0x70] sm:$0xff] %v1351_v29  ;;  %v2920_v31 = vadd.f32 %v2919_v30, %v2918_v27 }
 0x3c8   :  { %v1904_v0 = vpop.f32.mrf.mxu1 }
 0x3c9   :  { %v1354_v43 = vadd.f32 %v2920_v31, %v3682_v18  ;;  %v1905_v52 = vadd.f32 %v1904_v0, %v3734_v40 }
 0x3ca   :  { %v1906_v46 = vpop.f32.mrf.mxu1 }
 0x3cb   :  { %1372 = vst [vmem:[#allocation11 + $0x78] sm:$0xff] %v1354_v43  ;;  %v1907_v48 = vadd.f32 %v1906_v46, %v3731_v37  ;;  %v1983_v59 = vmax.f32 %v1905_v52, 0.0 }
 0x3cc   :  { %v1908_v47 = vpop.f32.mrf.mxu1 }
 0x3cd   :  { %v1909_v50 = vadd.f32 %v1908_v47, %v3734_v40  ;;  %v1984_v57 = vmax.f32 %v1907_v48, 0.0 }
 0x3ce   :  { %v1910_v53 = vpop.f32.mrf.mxu1 }
 0x3cf   :  { %v1911_v54 = vadd.f32 %v1910_v53, %v3731_v37  ;;  %v1985_v32 = vmax.f32 %v1909_v50, 0.0 }
 0x3d0   :  { %v1914_v18 = vpop.f32.mrf.mxu1 }
 0x3d1   :  { %v1986_v58 = vmax.f32 %v1911_v54, 0.0  ;;  %v2015_v62 = vpack.c.bf16 %v1985_v32, %v1983_v59  ;;  %v1915_v3 = vadd.f32 %v1914_v18, %v3734_v40 }
 0x3d2   :  { %v1916_v60 = vpop.f32.mrf.mxu1 }
 0x3d3   :  { %v2016_v61 = vpack.c.bf16 %v1986_v58, %v1984_v57  ;;  %v1917_v1 = vadd.f32 %v1916_v60, %v3731_v37  ;;  %v1987_v9 = vmax.f32 %v1915_v3, 0.0 }
 0x3d4   :  { %v1918_v63 = vpop.f32.mrf.mxu1 }
 0x3d5   :  { %v1919_v2 = vadd.f32 %v1918_v63, %v3734_v40  ;;  %2267 = vmatprep.mubr.bf16.mxu0 %v2016_v61  ;;  %v1988_v45 = vmax.f32 %v1917_v1, 0.0 }
 0x3d6   :  { %v1920_v4 = vpop.f32.mrf.mxu1  ;;  %2268 = vmatmul.mubr.bf16.vlgmr.msra.gmra.mxu0 %v2015_v62 }
 0x3d7   :  { %v1921_v5 = vadd.f32 %v1920_v4, %v3731_v37  ;;  %2922 = vmatpush3.bf16.msra.mxu0 %v3685_v26  ;;  %v1989_v6 = vmax.f32 %v1919_v2, 0.0 }
 0x3d8   :  { %v1924_v7 = vpop.f32.mrf.mxu1  ;;  %2923 = vmatprep.subr.bf16.mxu0 %v3687_v28 }
 0x3d9   :  { %v1990_v8 = vmax.f32 %v1921_v5, 0.0  ;;  %v2017_v55 = vpack.c.bf16 %v1989_v6, %v1987_v9  ;;  %v1925_v26 = vadd.f32 %v1924_v7, %v3734_v40 }
 0x3da   :  { %v1926_v56 = vpop.f32.mrf.mxu1 }
 0x3db   :  { %v2018_v44 = vpack.c.bf16 %v1990_v8, %v1988_v45  ;;  %2924 = vmatpush3.bf16.msra.mxu0 %v3692_v34  ;;  %v1927_v11 = vadd.f32 %v1926_v56, %v3731_v37 }
 0x3dc   :  { %v1928_v10 = vpop.f32.mrf.mxu1  ;;  %2925 = vmatprep.subr.bf16.mxu0 %v3694_v36  ;;  %v1991_v36 = vmax.f32 %v1925_v26, 0.0 }
 0x3dd   :  { %v1929_v12 = vadd.f32 %v1928_v10, %v3734_v40  ;;  %2277 = vmatprep.mubr.bf16.mxu0 %v2018_v44  ;;  %v1992_v34 = vmax.f32 %v1927_v11, 0.0 }
 0x3de   :  { %v1930_v13 = vpop.f32.mrf.mxu1  ;;  %2278 = vmatmul.mubr.bf16.gmra.mxu0 %v2017_v55 }
 0x3df   :  { %v1931_v28 = vadd.f32 %v1930_v13, %v3731_v37  ;;  %2926 = vmatpush3.bf16.msra.mxu0 %v3699_v42  ;;  %v1993_v14 = vmax.f32 %v1929_v12, 0.0 }
 0x3e0   :  { %v1934_v15 = vpop.f32.mrf.mxu1  ;;  %2927 = vmatprep.subr.bf16.mxu0 %v3701_v41 }
 0x3e1   :  { %v1994_v16 = vmax.f32 %v1931_v28, 0.0  ;;  %v2019_v20 = vpack.c.bf16 %v1993_v14, %v1991_v36  ;;  %v1935_v42 = vadd.f32 %v1934_v15, %v3734_v40 }
 0x3e2   :  { %v1936_v17 = vpop.f32.mrf.mxu1 }
 0x3e3   :  { %v2020_v19 = vpack.c.bf16 %v1994_v16, %v1992_v34  ;;  %2928 = vmatpush3.bf16.msra.mxu0 %v3706_v49  ;;  %v1937_v22 = vadd.f32 %v1936_v17, %v3731_v37  ;;  %v1995_v30 = vmax.f32 %v1935_v42, 0.0 }
 0x3e4   :  { %v1938_v21 = vpop.f32.mrf.mxu1  ;;  %2929 = vmatprep.subr.bf16.mxu0 %v3708_v51 }
 0x3e5   :  { %v1939_v23 = vadd.f32 %v1938_v21, %v3734_v40  ;;  %2287 = vmatprep.mubr.bf16.mxu0 %v2020_v19  ;;  %v1996_v49 = vmax.f32 %v1937_v22, 0.0 }
 0x3e6   :  { %v1940_v24 = vpop.f32.mrf.mxu1  ;;  %2288 = vmatmul.mubr.bf16.gmra.mxu0 %v2019_v20 }
 0x3e7   :  { %v1941_v41 = vadd.f32 %v1940_v24, %v3731_v37  ;;  %2930 = vmatpush3.bf16.msra.mxu0 %v3713_v33  ;;  %v1997_v25 = vmax.f32 %v1939_v23, 0.0 }
 0x3e8   :  { %v1944_v27 = vpop.f32.mrf.mxu1 }
 0x3e9   :  { %v1998_v29 = vmax.f32 %v1941_v41, 0.0  ;;  %v2021_v35 = vpack.c.bf16 %v1997_v25, %v1995_v30  ;;  %v1945_v47 = vadd.f32 %v1944_v27, %v3734_v40  ;;  %v3265_v30 = vld [vmem:[#allocation10 + $0x48] sm:$0xff]  }
 0x3ea   :  { %v1946_v31 = vpop.f32.mrf.mxu1 }
 0x3eb   :  { %v2022_v51 = vpack.c.bf16 %v1998_v29, %v1996_v49  ;;  %v1947_v43 = vadd.f32 %v1946_v31, %v3731_v37  ;;  %v1999_v32 = vmax.f32 %v1945_v47, 0.0  ;;  %v3263_v49 = vld [vmem:[#allocation10 + $0x50] sm:$0xff]   ;;  %v3268_v31 = vld [vmem:[#allocation10] sm:$0xff]  }
 0x3ec   :  { %v1948_v0 = vpop.f32.mrf.mxu1  ;;  %v3264_v29 = vld [vmem:[#allocation10 + $0x10] sm:$0xff]   ;;  %2931 = vmatprep.subr.bf16.mxu0 %v3263_v49  ;;  %2990 = vmatprep.subr.bf16.mxu1 %v3263_v49 }
 0x3ed   :  { %v1949_v46 = vadd.f32 %v1948_v0, %v3734_v40  ;;  %2297 = vmatprep.mubr.bf16.mxu0 %v2022_v51  ;;  %v2000_v53 = vmax.f32 %v1947_v43, 0.0  ;;  %2932 = vmatpush3.bf16.msra.mxu0 %v3264_v29  ;;  %v2063_v51 = vld [vmem:[%s3851_s6] sm:$0x3] }
 0x3ee   :  { %v1950_v48 = vpop.f32.mrf.mxu1  ;;  %2298 = vmatmul.mubr.bf16.gmra.mxu0 %v2021_v35  ;;  %2998 = vmatpush3.bf16.msra.mxu1 %v3264_v29  ;;  %v3781_v0 = vrot.slane %v2063_v51, %v3503_v38  ;;  %v3784_v43 = vrot.slane %v2063_v51, %v3505_v39 }
 0x3ef   :  { %v1951_v33 = vadd.f32 %v1950_v48, %v3731_v37  ;;  %v2001_v50 = vmax.f32 %v1949_v46, 0.0  ;;  %2933 = vmatprep.subr.bf16.mxu0 %v3265_v30  ;;  %2991 = vmatprep.subr.bf16.mxu1 %v3265_v30 }
 0x3f0   :  { %v1954_v52 = vpop.f32.mrf.mxu1 }
 0x3f1   :  { %v2002_v54 = vmax.f32 %v1951_v33, 0.0  ;;  %v2023_v58 = vpack.c.bf16 %v2001_v50, %v1999_v32  ;;  %v1955_v62 = vadd.f32 %v1954_v52, %v3734_v40 }
 0x3f2   :  { %v1956_v18 = vpop.f32.mrf.mxu1 }
 0x3f3   :  { %v2024_v57 = vpack.c.bf16 %v2002_v54, %v2000_v53  ;;  %v1957_v60 = vadd.f32 %v1956_v18, %v3731_v37  ;;  %v2003_v6 = vmax.f32 %v1955_v62, 0.0 }
 0x3f4   :  { %v1958_v59 = vpop.f32.mrf.mxu1 }
 0x3f5   :  { %v1959_v61 = vadd.f32 %v1958_v59, %v3734_v40  ;;  %2307 = vmatprep.mubr.bf16.mxu0 %v2024_v57  ;;  %v2004_v4 = vmax.f32 %v1957_v60, 0.0 }
 0x3f6   :  { %v1960_v63 = vpop.f32.mrf.mxu1  ;;  %2308 = vmatmul.mubr.bf16.gmra.mxu0 %v2023_v58 }
 0x3f7   :  { %v1961_v1 = vadd.f32 %v1960_v63, %v3731_v37  ;;  %v2005_v2 = vmax.f32 %v1959_v61, 0.0 }
 0x3f8   :  { %v1964_v3 = vpop.f32.mrf.mxu1 }
 0x3f9   :  { %v2006_v5 = vmax.f32 %v1961_v1, 0.0  ;;  %v2025_v8 = vpack.c.bf16 %v2005_v2, %v2003_v6  ;;  %v1965_v55 = vadd.f32 %v1964_v3, %v3734_v40 }
 0x3fa   :  { %v1966_v7 = vpop.f32.mrf.mxu1 }
 0x3fb   :  { %v2026_v45 = vpack.c.bf16 %v2006_v5, %v2004_v4  ;;  %v1967_v56 = vadd.f32 %v1966_v7, %v3731_v37  ;;  %v2007_v14 = vmax.f32 %v1965_v55, 0.0 }
 0x3fc   :  { %v1968_v9 = vpop.f32.mrf.mxu1 }
 0x3fd   :  { %v1969_v44 = vadd.f32 %v1968_v9, %v3734_v40  ;;  %2317 = vmatprep.mubr.bf16.mxu0 %v2026_v45  ;;  %v2008_v13 = vmax.f32 %v1967_v56, 0.0 }
 0x3fe   :  { %v1970_v10 = vpop.f32.mrf.mxu1  ;;  %2318 = vmatmul.mubr.bf16.gmra.mxu0 %v2025_v8 }
 0x3ff   :  { %v1971_v11 = vadd.f32 %v1970_v10, %v3731_v37  ;;  %v2009_v12 = vmax.f32 %v1969_v44, 0.0 }
 0x400   :  { %v1974_v26 = vpop.f32.mrf.mxu1 }
 0x401   :  { %v2010_v28 = vmax.f32 %v1971_v11, 0.0  ;;  %v2027_v16 = vpack.c.bf16 %v2009_v12, %v2007_v14  ;;  %v1975_v20 = vadd.f32 %v1974_v26, %v3734_v40 }
 0x402   :  { %v1976_v15 = vpop.f32.mrf.mxu1 }
 0x403   :  { %v2028_v34 = vpack.c.bf16 %v2010_v28, %v2008_v13  ;;  %v1977_v17 = vadd.f32 %v1976_v15, %v3731_v37  ;;  %v2011_v41 = vmax.f32 %v1975_v20, 0.0 }
 0x404   :  { %v1978_v36 = vpop.f32.mrf.mxu1 }
 0x405   :  { %v1979_v19 = vadd.f32 %v1978_v36, %v3734_v40  ;;  %2327 = vmatprep.mubr.bf16.mxu0 %v2028_v34  ;;  %v2012_v42 = vmax.f32 %v1977_v17, 0.0  ;;  %v3266_v40 = vld [vmem:[#allocation10 + $0x8] sm:$0xff]  }
 0x406   :  { %v1980_v21 = vpop.f32.mrf.mxu1  ;;  %2328 = vmatmul.mubr.bf16.gmra.mxu0 %v2027_v16  ;;  %2999 = vmatpush3.bf16.msra.mxu1 %v3266_v40 }
 0x407   :  { %v1981_v22 = vadd.f32 %v1980_v21, %v3731_v37  ;;  %v2013_v23 = vmax.f32 %v1979_v19, 0.0  ;;  %2934 = vmatpush3.bf16.msra.mxu0 %v3266_v40  ;;  %v3267_v37 = vld [vmem:[#allocation10 + $0x40] sm:$0xff]  }
 0x408   :  { %2935 = vmatprep.subr.bf16.mxu0 %v3267_v37  ;;  %2992 = vmatprep.subr.bf16.mxu1 %v3267_v37 }
 0x409   :  { %v2014_v24 = vmax.f32 %v1981_v22, 0.0  ;;  %v2029_v27 = vpack.c.bf16 %v2013_v23, %v2011_v41 }
 0x40a   :  { %3000 = vmatpush3.bf16.msra.mxu1 %v3268_v31 }
 0x40b   :  { %v2030_v25 = vpack.c.bf16 %v2014_v24, %v2012_v42  ;;  %2936 = vmatpush3.bf16.msra.mxu0 %v3268_v31 }
 0x40d   :  { %2337 = vmatprep.mubr.bf16.mxu0 %v2030_v25 }
 0x40e   :  { %2338 = vmatmul.mubr.bf16.gmra.mxu0 %v2029_v27 }
 0x496   :  { %v2269_v35 = vpop.f32.mrf.mxu0 }
 0x497   :  { %v2270_v50 = vadd.f32 %v2269_v35, %v3784_v43 }
 0x498   :  { %v2271_v46 = vpop.f32.mrf.mxu0 }
 0x499   :  { %v2272_v48 = vadd.f32 %v2271_v46, %v3781_v0  ;;  %v2348_v38 = vmax.f32 %v2270_v50, 0.0 }
 0x49a   :  { %v2273_v47 = vpop.f32.mrf.mxu0 }
 0x49b   :  { %v2274_v33 = vadd.f32 %v2273_v47, %v3784_v43  ;;  %v2349_v18 = vmax.f32 %v2272_v48, 0.0 }
 0x49c   :  { %v2275_v52 = vpop.f32.mrf.mxu0 }
 0x49d   :  { %v2276_v53 = vadd.f32 %v2275_v52, %v3781_v0  ;;  %v2350_v54 = vmax.f32 %v2274_v33, 0.0 }
 0x49e   :  { %v2279_v32 = vpop.f32.mrf.mxu0 }
 0x49f   :  { %v2351_v57 = vmax.f32 %v2276_v53, 0.0  ;;  %v2380_v39 = vpack.c.bf16 %v2350_v54, %v2348_v38  ;;  %v2280_v63 = vadd.f32 %v2279_v32, %v3784_v43 }
 0x4a0   :  { %v2281_v58 = vpop.f32.mrf.mxu0 }
 0x4a1   :  { %v2381_v59 = vpack.c.bf16 %v2351_v57, %v2349_v18  ;;  %v2282_v61 = vadd.f32 %v2281_v58, %v3781_v0  ;;  %v2352_v7 = vmax.f32 %v2280_v63, 0.0 }
 0x4a2   :  { %v2283_v60 = vpop.f32.mrf.mxu0 }
 0x4a3   :  { %v2284_v62 = vadd.f32 %v2283_v60, %v3784_v43  ;;  %2563 = vmatprep.mubr.bf16.mxu0 %v2381_v59  ;;  %v2353_v5 = vmax.f32 %v2282_v61, 0.0 }
 0x4a4   :  { %v2285_v1 = vpop.f32.mrf.mxu0  ;;  %2564 = vmatmul.mubr.bf16.vlgmr.msra.gmra.mxu0 %v2380_v39 }
 0x4a5   :  { %v2286_v2 = vadd.f32 %v2285_v1, %v3781_v0  ;;  %v2354_v3 = vmax.f32 %v2284_v62, 0.0 }
 0x4a6   :  { %v2289_v4 = vpop.f32.mrf.mxu0 }
 0x4a7   :  { %v2355_v6 = vmax.f32 %v2286_v2, 0.0  ;;  %v2382_v9 = vpack.c.bf16 %v2354_v3, %v2352_v7  ;;  %v2290_v10 = vadd.f32 %v2289_v4, %v3784_v43 }
 0x4a8   :  { %v2291_v45 = vpop.f32.mrf.mxu0 }
 0x4a9   :  { %v2383_v8 = vpack.c.bf16 %v2355_v6, %v2353_v5  ;;  %v2292_v44 = vadd.f32 %v2291_v45, %v3781_v0  ;;  %v2356_v15 = vmax.f32 %v2290_v10, 0.0 }
 0x4aa   :  { %v2293_v56 = vpop.f32.mrf.mxu0 }
 0x4ab   :  { %v2294_v55 = vadd.f32 %v2293_v56, %v3784_v43  ;;  %2571 = vmatprep.mubr.bf16.mxu0 %v2383_v8  ;;  %v2357_v28 = vmax.f32 %v2292_v44, 0.0 }
 0x4ac   :  { %v2295_v11 = vpop.f32.mrf.mxu0  ;;  %2572 = vmatmul.mubr.bf16.gmra.mxu0 %v2382_v9 }
 0x4ad   :  { %v2296_v12 = vadd.f32 %v2295_v11, %v3781_v0  ;;  %v2358_v26 = vmax.f32 %v2294_v55, 0.0 }
 0x4ae   :  { %v2299_v13 = vpop.f32.mrf.mxu0 }
 0x4af   :  { %v2359_v14 = vmax.f32 %v2296_v12, 0.0  ;;  %v2384_v36 = vpack.c.bf16 %v2358_v26, %v2356_v15  ;;  %v2300_v21 = vadd.f32 %v2299_v13, %v3784_v43 }
 0x4b0   :  { %v2301_v34 = vpop.f32.mrf.mxu0 }
 0x4b1   :  { %v2385_v16 = vpack.c.bf16 %v2359_v14, %v2357_v28  ;;  %v2302_v19 = vadd.f32 %v2301_v34, %v3781_v0  ;;  %v2360_v27 = vmax.f32 %v2300_v21, 0.0 }
 0x4b2   :  { %v2303_v17 = vpop.f32.mrf.mxu0 }
 0x4b3   :  { %v2304_v20 = vadd.f32 %v2303_v17, %v3784_v43  ;;  %2579 = vmatprep.mubr.bf16.mxu1 %v2385_v16  ;;  %v2361_v41 = vmax.f32 %v2302_v19, 0.0 }
 0x4b4   :  { %v2305_v22 = vpop.f32.mrf.mxu0  ;;  %2580 = vmatmul.mubr.bf16.vlgmr.msra.gmra.mxu1 %v2384_v36 }
 0x4b5   :  { %v2306_v23 = vadd.f32 %v2305_v22, %v3781_v0  ;;  %v2362_v42 = vmax.f32 %v2304_v20, 0.0 }
 0x4b6   :  { %v2309_v24 = vpop.f32.mrf.mxu0 }
 0x4b7   :  { %v2363_v25 = vmax.f32 %v2306_v23, 0.0  ;;  %v2386_v30 = vpack.c.bf16 %v2362_v42, %v2360_v27  ;;  %v2310_v51 = vadd.f32 %v2309_v24, %v3784_v43  ;;  %v3821_v24 = vld [vmem:[%s3853_s8] ss:$0 sm:$0xff]  ;;  %s3417_s8 = smov [#allocation11]  }
 0x4b8   :  { %v2311_v49 = vpop.f32.mrf.mxu0  ;;  %s2649_s26 = sshll.u32 %s3417_s8, 4  ;;  %s2650_s26 = int_to_ptr.vmem [resolvable:$true] %s2649_s26 }
 0x4b9   :  { %v2387_v29 = vpack.c.bf16 %v2363_v25, %v2361_v41  ;;  %v2312_v37 = vadd.f32 %v2311_v49, %v3781_v0  ;;  %v2364_v52 = vmax.f32 %v2310_v51, 0.0  ;;  %s3379_s5 = scalar_lea.vmem %s2650_s26, 4096  ;;  %p3384_p12 = scmp.lt.s32.totalorder %s2650_s26, %s2650_s26 }
 0x4ba   :  { %v2313_v40 = vpop.f32.mrf.mxu0  ;;  %p3380_p11 = scmp.ne.s32.totalorder %s2650_s26, %s3379_s5  ;;  %p3385_p13 = scmp.lt.s32.totalorder %s3379_s5, %s3379_s5 }
 0x4bb   :  { %v2314_v31 = vadd.f32 %v2313_v40, %v3784_v43  ;;  %2587 = vmatprep.mubr.bf16.mxu1 %v2387_v29  ;;  %v2365_v33 = vmax.f32 %v2312_v37, 0.0 }
 0x4bc   :  { %v2315_v35 = vpop.f32.mrf.mxu0  ;;  %2588 = vmatmul.mubr.bf16.gmra.mxu1 %v2386_v30  ;;  %p3386_p0 = por %p3385_p13, %p3384_p12 }
 0x4bd   :  { %v2316_v46 = vadd.f32 %v2315_v35, %v3781_v0  ;;  %v2366_v47 = vmax.f32 %v2314_v31, 0.0 }
 0x4be   :  { %v2319_v48 = vpop.f32.mrf.mxu0  ;;  %p3387_p1 = pnand %p3386_p0, %p3380_p11 }
 0x4bf   :  { %v2367_v50 = vmax.f32 %v2316_v46, 0.0  ;;  %v2388_v32 = vpack.c.bf16 %v2366_v47, %v2364_v52  ;;  %v2320_v58 = vadd.f32 %v2319_v48, %v3784_v43 }
 0x4c0   :  { %v2321_v53 = vpop.f32.mrf.mxu0 }
 0x4c1   :  { %v2389_v54 = vpack.c.bf16 %v2367_v50, %v2365_v33  ;;  %v2322_v57 = vadd.f32 %v2321_v53, %v3781_v0  ;;  %v2368_v1 = vmax.f32 %v2320_v58, 0.0 }
 0x4c2   :  { %v2323_v18 = vpop.f32.mrf.mxu0 }
 0x4c3   :  { %v2324_v38 = vadd.f32 %v2323_v18, %v3784_v43  ;;  %2595 = vmatprep.mubr.bf16.mxu1 %v2389_v54  ;;  %v2369_v62 = vmax.f32 %v2322_v57, 0.0 }
 0x4c4   :  { %v2325_v59 = vpop.f32.mrf.mxu0  ;;  %2596 = vmatmul.mubr.bf16.gmra.mxu1 %v2388_v32 }
 0x4c5   :  { %v2326_v39 = vadd.f32 %v2325_v59, %v3781_v0  ;;  %v2370_v60 = vmax.f32 %v2324_v38, 0.0 }
 0x4c6   :  { %v2329_v61 = vpop.f32.mrf.mxu0 }
 0x4c7   :  { %v2371_v63 = vmax.f32 %v2326_v39, 0.0  ;;  %v2390_v4 = vpack.c.bf16 %v2370_v60, %v2368_v1  ;;  %v2330_v45 = vadd.f32 %v2329_v61, %v3784_v43 }
 0x4c8   :  { %v2331_v2 = vpop.f32.mrf.mxu0 }
 0x4c9   :  { %v2391_v3 = vpack.c.bf16 %v2371_v63, %v2369_v62  ;;  %v2332_v6 = vadd.f32 %v2331_v2, %v3781_v0  ;;  %v2372_v11 = vmax.f32 %v2330_v45, 0.0 }
 0x4ca   :  { %v2333_v5 = vpop.f32.mrf.mxu0 }
 0x4cb   :  { %v2334_v7 = vadd.f32 %v2333_v5, %v3784_v43  ;;  %2603 = vmatprep.mubr.bf16.mxu1 %v2391_v3  ;;  %v2373_v55 = vmax.f32 %v2332_v6, 0.0 }
 0x4cc   :  { %v2335_v8 = vpop.f32.mrf.mxu0  ;;  %2604 = vmatmul.mubr.bf16.gmra.mxu1 %v2390_v4 }
 0x4cd   :  { %v2336_v9 = vadd.f32 %v2335_v8, %v3781_v0  ;;  %v2374_v56 = vmax.f32 %v2334_v7, 0.0 }
 0x4ce   :  { %v2339_v44 = vpop.f32.mrf.mxu0 }
 0x4cf   :  { %v2375_v10 = vmax.f32 %v2336_v9, 0.0  ;;  %v2392_v13 = vpack.c.bf16 %v2374_v56, %v2372_v11  ;;  %v2340_v34 = vadd.f32 %v2339_v44, %v3784_v43 }
 0x4d0   :  { %v2341_v12 = vpop.f32.mrf.mxu0 }
 0x4d1   :  { %v2393_v26 = vpack.c.bf16 %v2375_v10, %v2373_v55  ;;  %v2342_v14 = vadd.f32 %v2341_v12, %v3781_v0  ;;  %v2376_v21 = vmax.f32 %v2340_v34, 0.0 }
 0x4d2   :  { %v2343_v28 = vpop.f32.mrf.mxu0 }
 0x4d3   :  { %v2344_v15 = vadd.f32 %v2343_v28, %v3784_v43  ;;  %2611 = vmatprep.mubr.bf16.mxu1 %v2393_v26  ;;  %v2377_v19 = vmax.f32 %v2342_v14, 0.0 }
 0x4d4   :  { %v2345_v16 = vpop.f32.mrf.mxu0  ;;  %2612 = vmatmul.mubr.bf16.gmra.mxu1 %v2392_v13 }
 0x4d5   :  { %v2346_v36 = vadd.f32 %v2345_v16, %v3781_v0  ;;  %v2378_v17 = vmax.f32 %v2344_v15, 0.0 }
 0x4d7   :  { %v2379_v20 = vmax.f32 %v2346_v36, 0.0  ;;  %v2394_v23 = vpack.c.bf16 %v2378_v17, %v2376_v21 }
 0x4d9   :  { %v2395_v22 = vpack.c.bf16 %v2379_v20, %v2377_v19 }
 0x4db   :  { %2619 = vmatprep.mubr.bf16.mxu1 %v2395_v22 }
 0x4dc   :  { %2620 = vmatmul.mubr.bf16.gmra.mxu1 %v2394_v23 }
 0x564   :  { %v2937_v42 = vpop.f32.mrf.mxu0 }
 0x566   :  { %v2938_v41 = vpop.f32.mrf.mxu0 }
 0x567   :  { %v2939_v43 = vadd.f32 %v2938_v41, %v2937_v42 }
 0x568   :  { %v2940_v25 = vpop.f32.mrf.mxu0 }
 0x569   :  { %v2566_v27 = vadd.f32 %v2939_v43, %v3821_v24 }
 0x56a   :  { %v2941_v0 = vpop.f32.mrf.mxu0 }
 0x56b   :  { %2628 = vst [vmem:[#allocation11 + $0x80] sm:$0xff] %v2566_v27  ;;  %v2942_v49 = vadd.f32 %v2941_v0, %v2940_v25 }
 0x56c   :  { %v2943_v29 = vpop.f32.mrf.mxu0 }
 0x56d   :  { %v2569_v30 = vadd.f32 %v2942_v49, %v3821_v24 }
 0x56e   :  { %v2944_v40 = vpop.f32.mrf.mxu0 }
 0x56f   :  { %2629 = vst [vmem:[#allocation11 + $0x88] sm:$0xff] %v2569_v30  ;;  %v2945_v37 = vadd.f32 %v2944_v40, %v2943_v29 }
 0x570   :  { %v2946_v31 = vpop.f32.mrf.mxu0 }
 0x571   :  { %v2574_v51 = vadd.f32 %v2945_v37, %v3821_v24 }
 0x572   :  { %v2947_v35 = vpop.f32.mrf.mxu0 }
 0x573   :  { %2630 = vst [vmem:[#allocation11 + $0x90] sm:$0xff] %v2574_v51  ;;  %v2948_v46 = vadd.f32 %v2947_v35, %v2946_v31 }
 0x574   :  { %v2949_v47 = vpop.f32.mrf.mxu1 }
 0x575   :  { %v2577_v48 = vadd.f32 %v2948_v46, %v3821_v24 }
 0x576   :  { %v2950_v33 = vpop.f32.mrf.mxu1 }
 0x577   :  { %2631 = vst [vmem:[#allocation11 + $0x98] sm:$0xff] %v2577_v48  ;;  %v2951_v50 = vadd.f32 %v2950_v33, %v2949_v47 }
 0x578   :  { %v2952_v52 = vpop.f32.mrf.mxu1 }
 0x579   :  { %v2582_v53 = vadd.f32 %v2951_v50, %v3821_v24 }
 0x57a   :  { %v2953_v54 = vpop.f32.mrf.mxu1 }
 0x57b   :  { %2632 = vst [vmem:[#allocation11 + $0xa0] sm:$0xff] %v2582_v53  ;;  %v2954_v32 = vadd.f32 %v2953_v54, %v2952_v52 }
 0x57c   :  { %v2955_v18 = vpop.f32.mrf.mxu1 }
 0x57d   :  { %v2585_v57 = vadd.f32 %v2954_v32, %v3821_v24 }
 0x57e   :  { %v2956_v38 = vpop.f32.mrf.mxu1 }
 0x57f   :  { %2633 = vst [vmem:[#allocation11 + $0xa8] sm:$0xff] %v2585_v57  ;;  %v2957_v58 = vadd.f32 %v2956_v38, %v2955_v18 }
 0x580   :  { %v2958_v59 = vpop.f32.mrf.mxu1 }
 0x581   :  { %v2590_v39 = vadd.f32 %v2957_v58, %v3821_v24 }
 0x582   :  { %v2959_v60 = vpop.f32.mrf.mxu1 }
 0x583   :  { %2634 = vst [vmem:[#allocation11 + $0xb0] sm:$0xff] %v2590_v39  ;;  %v2960_v61 = vadd.f32 %v2959_v60, %v2958_v59 }
 0x584   :  { %v2961_v62 = vpop.f32.mrf.mxu1 }
 0x585   :  { %v2593_v63 = vadd.f32 %v2960_v61, %v3821_v24 }
 0x586   :  { %v2962_v1 = vpop.f32.mrf.mxu1 }
 0x587   :  { %2635 = vst [vmem:[#allocation11 + $0xb8] sm:$0xff] %v2593_v63  ;;  %v2963_v2 = vadd.f32 %v2962_v1, %v2961_v62 }
 0x588   :  { %v2964_v3 = vpop.f32.mrf.mxu1 }
 0x589   :  { %v2598_v4 = vadd.f32 %v2963_v2, %v3821_v24 }
 0x58a   :  { %v2965_v5 = vpop.f32.mrf.mxu1 }
 0x58b   :  { %2636 = vst [vmem:[#allocation11 + $0xc0] sm:$0xff] %v2598_v4  ;;  %v2966_v6 = vadd.f32 %v2965_v5, %v2964_v3 }
 0x58c   :  { %v2967_v7 = vpop.f32.mrf.mxu1 }
 0x58d   :  { %v2601_v45 = vadd.f32 %v2966_v6, %v3821_v24 }
 0x58e   :  { %v2968_v8 = vpop.f32.mrf.mxu1 }
 0x58f   :  { %2637 = vst [vmem:[#allocation11 + $0xc8] sm:$0xff] %v2601_v45  ;;  %v2969_v9 = vadd.f32 %v2968_v8, %v2967_v7 }
 0x590   :  { %v2970_v56 = vpop.f32.mrf.mxu1 }
 0x591   :  { %v2606_v44 = vadd.f32 %v2969_v9, %v3821_v24 }
 0x592   :  { %v2971_v55 = vpop.f32.mrf.mxu1 }
 0x593   :  { %2638 = vst [vmem:[#allocation11 + $0xd0] sm:$0xff] %v2606_v44  ;;  %v2972_v10 = vadd.f32 %v2971_v55, %v2970_v56 }
 0x594   :  { %v2973_v11 = vpop.f32.mrf.mxu1 }
 0x595   :  { %v2609_v12 = vadd.f32 %v2972_v10, %v3821_v24 }
 0x596   :  { %v2974_v26 = vpop.f32.mrf.mxu1 }
 0x597   :  { %2639 = vst [vmem:[#allocation11 + $0xd8] sm:$0xff] %v2609_v12  ;;  %v2975_v13 = vadd.f32 %v2974_v26, %v2973_v11 }
 0x598   :  { %v2976_v28 = vpop.f32.mrf.mxu1 }
 0x599   :  { %v2614_v14 = vadd.f32 %v2975_v13, %v3821_v24 }
 0x59a   :  { %v2977_v15 = vpop.f32.mrf.mxu1 }
 0x59b   :  { %2640 = vst [vmem:[#allocation11 + $0xe0] sm:$0xff] %v2614_v14  ;;  %v2978_v34 = vadd.f32 %v2977_v15, %v2976_v28 }
 0x59c   :  { %v2979_v16 = vpop.f32.mrf.mxu1 }
 0x59d   :  { %v2617_v36 = vadd.f32 %v2978_v34, %v3821_v24 }
 0x59e   :  { %v2980_v17 = vpop.f32.mrf.mxu1 }
 0x59f   :  { %2641 = vst [vmem:[#allocation11 + $0xe8] sm:$0xff] %v2617_v36  ;;  %v2981_v19 = vadd.f32 %v2980_v17, %v2979_v16 }
 0x5a0   :  { %v2982_v20 = vpop.f32.mrf.mxu1 }
 0x5a1   :  { %v2622_v21 = vadd.f32 %v2981_v19, %v3821_v24 }
 0x5a2   :  { %v2983_v22 = vpop.f32.mrf.mxu1 }
 0x5a3   :  { %2642 = vst [vmem:[#allocation11 + $0xf0] sm:$0xff] %v2622_v21  ;;  %v2984_v23 = vadd.f32 %v2983_v22, %v2982_v20 }
 0x5a5   :  { %v2625_v42 = vadd.f32 %v2984_v23, %v3821_v24 }
 0x5a7   :  { %2643 = vst [vmem:[#allocation11 + $0xf8] sm:$0xff] %v2625_v42 }
 0x5a8   :  { %3390 = shalt.err (!%p3387_p1)
}
 0x5a9   :  { %2655 = dma.vmem_to_hbm [thread:$0]  %s2650_s26, 4096, %s3854_s9, [#allocation4], %s3409_s14, %s3409_s14, %s3410_s15  }
 0x5aa   :  { %3405 = dma.done.wait [#allocation4], 4096  }
 0x5ab   :  { %3406 = vsyncadd [#allocation4], 4294963200 }
 0x5ac   :  { %2659 = vsyncpa [#allocation3], 1 }
 0x5ad   :  { %2660 = vsyncpa [#allocation6], 1 }
 0x5ae   :  { %2661 = vsyncpa [#allocation9], 1 }
 0x5af   :  { %2662 = vsyncpa [#allocation4], 1 }

</bundles_post_ra>
